<compile_context>
chip_gen: v7x
topology: tpu7x:2x2x1
jax: 0.10.0
libtpu: 0.0.40
codegen_flags: <defaults>
</compile_context>

<pallas_src>
import functools

import jax
import jax.numpy as jnp
from jax.experimental import pallas as pl
from jax.experimental.pallas import tpu as pltpu


# ----------------------------------------------------------------------------
# Kernel-side math helpers
# ----------------------------------------------------------------------------
def _layer_norm(x, gamma, beta, eps=1e-5):
    """LayerNorm over the last (lane) dim; statistics in float32."""
    mu = jnp.mean(x, axis=-1, keepdims=True)
    var = jnp.mean(jnp.square(x - mu), axis=-1, keepdims=True)
    return (x - mu) * jax.lax.rsqrt(var + eps) * gamma[None, :] + beta[None, :]


def _attention_core(q, k, v, bias, w_o, b_o):
    """Head-batched attention core.

    q: (H, Sq, dh) f32 (scale already folded into the Q projection)
    k, v: (H, Sk, dh) f32
    bias: (Sq, Sk) f32 additive mask bias (0 keep / -1e9 masked)
    w_o: (H, dh, D) bf16, b_o: (1, D) f32
    returns: (Sq, D) f32
    """
    bf16 = jnp.bfloat16
    # scores: batched (over heads) matmul, bf16 inputs, f32 accumulation
    s = jnp.einsum("hqd,hkd->hqk", q.astype(bf16), k.astype(bf16),
                   preferred_element_type=jnp.float32)
    s = s + bias[None, :, :]                       # hoisted additive mask
    m = jnp.max(s, axis=-1, keepdims=True)         # f32 softmax statistics
    p = jnp.exp(s - m)
    denom = jnp.sum(p, axis=-1, keepdims=True)
    p = p * pl.reciprocal(denom, approx=True)      # EUP slot, not a VALU divide
    o = jnp.einsum("hqk,hkd->hqd", p.astype(bf16), v.astype(bf16),
                   preferred_element_type=jnp.float32)
    # output projection: batched per-head matmul, then unrolled add over heads
    op = jnp.einsum("hqd,hdD->hqD", o.astype(bf16), w_o,
                    preferred_element_type=jnp.float32)
    acc = op[0]
    for h in range(1, op.shape[0]):                # H is small and static
        acc = acc + op[h]
    return acc + b_o


# ----------------------------------------------------------------------------
# Fused Pallas kernel: one grid step == one batch element, whole layer fused.
# ----------------------------------------------------------------------------
def decoder_layer_kernel(x_ref, pe_ref, enc_ref, tgt_bias_ref, src_bias_ref,
                         w1_qkv_ref, b1_qkv_ref, w1_o_ref, b1_o_ref,
                         w2_q_ref, b2_q_ref, w2_kv_ref, b2_kv_ref,
                         w2_o_ref, b2_o_ref,
                         ln_g_ref, ln_b_ref,
                         ffn_w1_ref, ffn_b1_ref, ffn_w2_ref, ffn_b2_ref,
                         out_ref, *, num_heads):
    bf16 = jnp.bfloat16
    H = num_heads
    x_in = x_ref[0]                        # (S, D) f32, residual source
    enc = enc_ref[0]                       # (Se, D) f32
    S, D = x_in.shape
    Se = enc.shape[0]
    dh = D // H
    ln_g = ln_g_ref[...]                   # (3, D)
    ln_b = ln_b_ref[...]                   # (3, D)

    # inp_embed: positional-encoding add (dropout1/2/3 are identity at p=0)
    x = x_in + pe_ref[...]

    # --- masked multi-head self-attention + residual + norm1 -----------------
    xb = jnp.broadcast_to(x.astype(bf16)[None], (H, S, D))
    qkv = jnp.einsum("hsD,hDe->hse", xb, w1_qkv_ref[...],
                     preferred_element_type=jnp.float32) + b1_qkv_ref[...]
    a1 = _attention_core(qkv[:, :, 0:dh],
                         qkv[:, :, dh:2 * dh],
                         qkv[:, :, 2 * dh:3 * dh],
                         tgt_bias_ref[...], w1_o_ref[...], b1_o_ref[...])
    x = _layer_norm(a1 + x_in, ln_g[0], ln_b[0])

    # --- encoder-decoder cross-attention + residual + norm2 ------------------
    xb = jnp.broadcast_to(x.astype(bf16)[None], (H, S, D))
    eb = jnp.broadcast_to(enc.astype(bf16)[None], (H, Se, D))
    q2 = jnp.einsum("hsD,hDd->hsd", xb, w2_q_ref[...],
                    preferred_element_type=jnp.float32) + b2_q_ref[...]
    kv2 = jnp.einsum("hsD,hDe->hse", eb, w2_kv_ref[...],
                     preferred_element_type=jnp.float32) + b2_kv_ref[...]
    a2 = _attention_core(q2, kv2[:, :, 0:dh], kv2[:, :, dh:2 * dh],
                         src_bias_ref[...], w2_o_ref[...], b2_o_ref[...])
    x = _layer_norm(a2 + x, ln_g[1], ln_b[1])

    # --- position-wise FFN (Linear -> ReLU -> Linear) + residual + norm3 -----
    h = jnp.dot(x.astype(bf16), ffn_w1_ref[...],
                preferred_element_type=jnp.float32) + ffn_b1_ref[...]
    h = jnp.maximum(h, 0.0)
    f = jnp.dot(h.astype(bf16), ffn_w2_ref[...],
                preferred_element_type=jnp.float32) + ffn_b2_ref[...]
    x = _layer_norm(f + x, ln_g[2], ln_b[2])

    out_ref[0] = x                         # D == 128 -> lane-dense, unmasked store


# ----------------------------------------------------------------------------
# Wrapper-side (free) parameter packing
# ----------------------------------------------------------------------------
def _pack_params(params, num_heads):
    """Per-head weight stacks, fused QKV / KV, 1/sqrt(dh) folded into the Q
    projection, matmul weights cast to bf16 (biases stay f32, added after the
    f32-accumulated matmul)."""
    a1, a2 = params["attn1"], params["attn2"]
    D = a1["wq"].shape[0]
    H = num_heads
    dh = D // H
    scale = 1.0 / jnp.sqrt(jnp.float32(dh))
    bf16 = jnp.bfloat16

    def heads_cols(w):                     # (D, D) -> (H, D, dh)
        return jnp.stack([w[:, h * dh:(h + 1) * dh] for h in range(H)], axis=0)

    def heads_bias(b):                     # (D,) -> (H, 1, dh)
        return jnp.stack([b[h * dh:(h + 1) * dh] for h in range(H)],
                         axis=0)[:, None, :]

    w1_qkv = jnp.concatenate([heads_cols(a1["wq"]) * scale,
                              heads_cols(a1["wk"]),
                              heads_cols(a1["wv"])], axis=-1)     # (H, D, 3*dh)
    b1_qkv = jnp.concatenate([heads_bias(a1["bq"]) * scale,
                              heads_bias(a1["bk"]),
                              heads_bias(a1["bv"])], axis=-1)     # (H, 1, 3*dh)
    w2_kv = jnp.concatenate([heads_cols(a2["wk"]),
                             heads_cols(a2["wv"])], axis=-1)      # (H, D, 2*dh)
    b2_kv = jnp.concatenate([heads_bias(a2["bk"]),
                             heads_bias(a2["bv"])], axis=-1)      # (H, 1, 2*dh)

    return dict(
        w1_qkv=w1_qkv.astype(bf16), b1_qkv=b1_qkv,
        w1_o=a1["wo"].reshape(H, dh, D).astype(bf16),
        b1_o=a1["bo"].reshape(1, D),
        w2_q=(heads_cols(a2["wq"]) * scale).astype(bf16),
        b2_q=heads_bias(a2["bq"]) * scale,
        w2_kv=w2_kv.astype(bf16), b2_kv=b2_kv,
        w2_o=a2["wo"].reshape(H, dh, D).astype(bf16),
        b2_o=a2["bo"].reshape(1, D),
        ln_g=params["ln_g"], ln_b=params["ln_b"],
        ffn_w1=params["ffn_w1"].astype(bf16),
        ffn_b1=params["ffn_b1"].reshape(1, -1),
        ffn_w2=params["ffn_w2"].astype(bf16),
        ffn_b2=params["ffn_b2"].reshape(1, -1),
    )


def decoder_layer(x, enc, tgt_mask, src_mask, pe, params, num_heads):
    B, S, D = x.shape
    Se = enc.shape[1]
    pk = _pack_params(params, num_heads)

    # Hoisted mask handling: additive bias, 0 where attended / -1e9 where masked.
    tgt_bias = (tgt_mask.astype(jnp.float32) - 1.0) * 1e9
    src_bias = (src_mask.astype(jnp.float32) - 1.0) * 1e9

    def rep(shape):                        # whole-array block, same every step
        n = len(shape)
        return pl.BlockSpec(shape, lambda b, n=n: (0,) * n)

    in_specs = [
        pl.BlockSpec((1, S, D), lambda b: (b, 0, 0)),      # x
        rep((S, D)),                                       # pe
        pl.BlockSpec((1, Se, D), lambda b: (b, 0, 0)),     # enc
        rep((S, S)), rep((S, Se)),                         # additive mask biases
        rep(pk["w1_qkv"].shape), rep(pk["b1_qkv"].shape),  # self-attn fused QKV
        rep(pk["w1_o"].shape), rep(pk["b1_o"].shape),      # self-attn out proj
        rep(pk["w2_q"].shape), rep(pk["b2_q"].shape),      # cross-attn Q
        rep(pk["w2_kv"].shape), rep(pk["b2_kv"].shape),    # cross-attn fused KV
        rep(pk["w2_o"].shape), rep(pk["b2_o"].shape),      # cross-attn out proj
        rep(pk["ln_g"].shape), rep(pk["ln_b"].shape),      # layernorm params
        rep(pk["ffn_w1"].shape), rep(pk["ffn_b1"].shape),  # FFN
        rep(pk["ffn_w2"].shape), rep(pk["ffn_b2"].shape),
    ]
    out_specs = pl.BlockSpec((1, S, D), lambda b: (b, 0, 0))

    kernel = functools.partial(decoder_layer_kernel, num_heads=num_heads)
    return pl.pallas_call(
        kernel,
        grid=(B,),
        in_specs=in_specs,
        out_specs=out_specs,
        out_shape=jax.ShapeDtypeStruct((B, S, D), jnp.float32),
        compiler_params=pltpu.CompilerParams(
            dimension_semantics=("parallel",),   # B=2 -> one step per v7x TC
            vmem_limit_bytes=32 * 1024 * 1024),
    )(x, pe, enc, tgt_bias, src_bias,
      pk["w1_qkv"], pk["b1_qkv"], pk["w1_o"], pk["b1_o"],
      pk["w2_q"], pk["b2_q"], pk["w2_kv"], pk["b2_kv"], pk["w2_o"], pk["b2_o"],
      pk["ln_g"], pk["ln_b"],
      pk["ffn_w1"], pk["ffn_b1"], pk["ffn_w2"], pk["ffn_b2"])


# ----------------------------------------------------------------------------
# Plain-JAX (XLA) reference with the same mixed-precision matmul policy as the
# kernel (bf16 inputs, f32 accumulation, f32 softmax / LayerNorm), but exact
# softmax division.  Used for the correctness check.
# ----------------------------------------------------------------------------
def decoder_layer_ref(x, enc, tgt_mask, src_mask, pe, params, num_heads):
    pk = _pack_params(params, num_heads)
    f32, bf16 = jnp.float32, jnp.bfloat16
    D = x.shape[-1]
    dh = D // num_heads
    tgt_bias = (tgt_mask.astype(f32) - 1.0) * 1e9
    src_bias = (src_mask.astype(f32) - 1.0) * 1e9

    def ln(t, g, b, eps=1e-5):
        mu = jnp.mean(t, axis=-1, keepdims=True)
        var = jnp.mean(jnp.square(t - mu), axis=-1, keepdims=True)
        return (t - mu) * jax.lax.rsqrt(var + eps) * g + b

    def attn(q, k, v, bias, w_o, b_o):
        s = jnp.einsum("bhqd,bhkd->bhqk", q.astype(bf16), k.astype(bf16),
                       preferred_element_type=f32) + bias[None, None]
        p = jax.nn.softmax(s, axis=-1)
        o = jnp.einsum("bhqk,bhkd->bhqd", p.astype(bf16), v.astype(bf16),
                       preferred_element_type=f32)
        out = jnp.einsum("bhqd,hdD->bqD", o.astype(bf16), w_o,
                         preferred_element_type=f32)
        return out + b_o[None]

    x0 = x
    xe = x + pe[None]
    qkv = jnp.einsum("bsD,hDe->bhse", xe.astype(bf16), pk["w1_qkv"],
                     preferred_element_type=f32) + pk["b1_qkv"][None]
    a1 = attn(qkv[..., :dh], qkv[..., dh:2 * dh], qkv[..., 2 * dh:],
              tgt_bias, pk["w1_o"], pk["b1_o"])
    x1 = ln(a1 + x0, pk["ln_g"][0], pk["ln_b"][0])

    q2 = jnp.einsum("bsD,hDd->bhsd", x1.astype(bf16), pk["w2_q"],
                    preferred_element_type=f32) + pk["b2_q"][None]
    kv2 = jnp.einsum("bsD,hDe->bhse", enc.astype(bf16), pk["w2_kv"],
                     preferred_element_type=f32) + pk["b2_kv"][None]
    a2 = attn(q2, kv2[..., :dh], kv2[..., dh:], src_bias,
              pk["w2_o"], pk["b2_o"])
    x2 = ln(a2 + x1, pk["ln_g"][1], pk["ln_b"][1])

    h = jnp.maximum(
        jnp.dot(x2.astype(bf16), pk["ffn_w1"],
                preferred_element_type=f32) + pk["ffn_b1"], 0.0)
    f = jnp.dot(h.astype(bf16), pk["ffn_w2"],
                preferred_element_type=f32) + pk["ffn_b2"]
    return ln(f + x2, pk["ln_g"][2], pk["ln_b"][2])


# ----------------------------------------------------------------------------
# Deterministic parameter construction + driver
# ----------------------------------------------------------------------------
def sinusoidal_pe(max_len, d_model):
    pos = jnp.arange(max_len, dtype=jnp.float32)[:, None]
    i = jnp.arange(d_model // 2, dtype=jnp.float32)[None, :]
    angle = pos / jnp.power(10000.0, (2.0 * i) / d_model)
    pe = jnp.zeros((max_len, d_model), jnp.float32)
    pe = pe.at[:, 0::2].set(jnp.sin(angle))
    pe = pe.at[:, 1::2].set(jnp.cos(angle))
    return pe


def make_params(key, d_model, d_hidden):
    it = iter(jax.random.split(key, 24))
    sc = 0.02

    def w(shape):
        return sc * jax.random.normal(next(it), shape, jnp.float32)

    def attn():
        return dict(wq=w((d_model, d_model)), bq=w((d_model,)),
                    wk=w((d_model, d_model)), bk=w((d_model,)),
                    wv=w((d_model, d_model)), bv=w((d_model,)),
                    wo=w((d_model, d_model)), bo=w((d_model,)))

    return dict(
        attn1=attn(),
        attn2=attn(),
        ln_g=1.0 + 0.1 * jax.random.normal(next(it), (3, d_model), jnp.float32),
        ln_b=0.1 * jax.random.normal(next(it), (3, d_model), jnp.float32),
        ffn_w1=w((d_model, d_hidden)), ffn_b1=w((d_hidden,)),
        ffn_w2=w((d_hidden, d_model)), ffn_b2=w((d_model,)),
    )


if __name__ == "__main__":
    # Module hyper-parameters (small, but TPU-friendly: d_model == 128 lanes).
    vocab_size = 1000     # unused: see TODO(synk) at top of file
    d_model = 128
    max_len = 16
    num_heads = 4
    d_hidden = 256
    n_layers = 1          # unused by a single DecoderLayer forward
    B, S, Se = 2, 8, 8

    key = jax.random.PRNGKey(0)
    kx, kenc, kp = jax.random.split(key, 3)

    x = jax.random.normal(kx, (B, S, d_model), jnp.float32)
    enc = jax.random.normal(kenc, (B, Se, d_model), jnp.float32)
    tgt_mask = jnp.tril(jnp.ones((S, S), jnp.float32))   # causal self-attn mask
    src_mask = jnp.ones((S, Se), jnp.float32)            # no source masking

    params = make_params(kp, d_model, d_hidden)
    pe = sinusoidal_pe(max_len, d_model)[:S]

    fn = jax.jit(decoder_layer, static_argnames=("num_heads",))
    out = fn(x, enc, tgt_mask, src_mask, pe, params, num_heads=num_heads)
    out = jax.block_until_ready(out)

    ref = decoder_layer_ref(x, enc, tgt_mask, src_mask, pe, params, num_heads)
    assert out.shape == (B, S, d_model)
    # tolerance covers the approx EUP reciprocal + accumulation-order differences
    assert jnp.allclose(out, ref, rtol=2e-3, atol=2e-3), (
        "mismatch vs JAX reference: max |diff| = "
        + str(float(jnp.max(jnp.abs(out - ref)))))

    print("KERNEL_OK")
</pallas_src>

<mosaic_0001>
module attributes {stable_mosaic.version = 11 : i64} {
  func.func @decoder_layer_kernel(%arg0: i32, %arg1: memref<1x8x128xf32, #tpu.memory_space<vmem>>, %arg2: memref<8x128xf32, #tpu.memory_space<vmem>>, %arg3: memref<1x8x128xf32, #tpu.memory_space<vmem>>, %arg4: memref<8x8xf32, #tpu.memory_space<vmem>>, %arg5: memref<8x8xf32, #tpu.memory_space<vmem>>, %arg6: memref<4x128x96xbf16, #tpu.memory_space<vmem>>, %arg7: memref<4x1x96xf32, #tpu.memory_space<vmem>>, %arg8: memref<4x32x128xbf16, #tpu.memory_space<vmem>>, %arg9: memref<1x128xf32, #tpu.memory_space<vmem>>, %arg10: memref<4x128x32xbf16, #tpu.memory_space<vmem>>, %arg11: memref<4x1x32xf32, #tpu.memory_space<vmem>>, %arg12: memref<4x128x64xbf16, #tpu.memory_space<vmem>>, %arg13: memref<4x1x64xf32, #tpu.memory_space<vmem>>, %arg14: memref<4x32x128xbf16, #tpu.memory_space<vmem>>, %arg15: memref<1x128xf32, #tpu.memory_space<vmem>>, %arg16: memref<3x128xf32, #tpu.memory_space<vmem>>, %arg17: memref<3x128xf32, #tpu.memory_space<vmem>>, %arg18: memref<128x256xbf16, #tpu.memory_space<vmem>>, %arg19: memref<1x256xf32, #tpu.memory_space<vmem>>, %arg20: memref<256x128xbf16, #tpu.memory_space<vmem>>, %arg21: memref<1x128xf32, #tpu.memory_space<vmem>>, %arg22: memref<1x8x128xf32, #tpu.memory_space<vmem>>) attributes {dimension_semantics = [#tpu.dimension_semantics<parallel>], iteration_bounds = array<i64: 2>, scalar_prefetch = 0 : i64, scratch_operands = 0 : i64, tpu.core_type = #tpu.core_type<tc>, window_params = [{transform_indices = @transform_0, window_bounds = array<i64: 1, 8, 128>}, {pipeline_mode = #tpu.pipeline_mode<synchronous>, transform_indices = @transform_1, window_bounds = array<i64: 8, 128>}, {transform_indices = @transform_2, window_bounds = array<i64: 1, 8, 128>}, {pipeline_mode = #tpu.pipeline_mode<synchronous>, transform_indices = @transform_3, window_bounds = array<i64: 8, 8>}, {pipeline_mode = #tpu.pipeline_mode<synchronous>, transform_indices = @transform_4, window_bounds = array<i64: 8, 8>}, {pipeline_mode = #tpu.pipeline_mode<synchronous>, transform_indices = @transform_5, window_bounds = array<i64: 4, 128, 96>}, {pipeline_mode = #tpu.pipeline_mode<synchronous>, transform_indices = @transform_6, window_bounds = array<i64: 4, 1, 96>}, {pipeline_mode = #tpu.pipeline_mode<synchronous>, transform_indices = @transform_7, window_bounds = array<i64: 4, 32, 128>}, {pipeline_mode = #tpu.pipeline_mode<synchronous>, transform_indices = @transform_8, window_bounds = array<i64: 1, 128>}, {pipeline_mode = #tpu.pipeline_mode<synchronous>, transform_indices = @transform_9, window_bounds = array<i64: 4, 128, 32>}, {pipeline_mode = #tpu.pipeline_mode<synchronous>, transform_indices = @transform_10, window_bounds = array<i64: 4, 1, 32>}, {pipeline_mode = #tpu.pipeline_mode<synchronous>, transform_indices = @transform_11, window_bounds = array<i64: 4, 128, 64>}, {pipeline_mode = #tpu.pipeline_mode<synchronous>, transform_indices = @transform_12, window_bounds = array<i64: 4, 1, 64>}, {pipeline_mode = #tpu.pipeline_mode<synchronous>, transform_indices = @transform_13, window_bounds = array<i64: 4, 32, 128>}, {pipeline_mode = #tpu.pipeline_mode<synchronous>, transform_indices = @transform_14, window_bounds = array<i64: 1, 128>}, {pipeline_mode = #tpu.pipeline_mode<synchronous>, transform_indices = @transform_15, window_bounds = array<i64: 3, 128>}, {pipeline_mode = #tpu.pipeline_mode<synchronous>, transform_indices = @transform_16, window_bounds = array<i64: 3, 128>}, {pipeline_mode = #tpu.pipeline_mode<synchronous>, transform_indices = @transform_17, window_bounds = array<i64: 128, 256>}, {pipeline_mode = #tpu.pipeline_mode<synchronous>, transform_indices = @transform_18, window_bounds = array<i64: 1, 256>}, {pipeline_mode = #tpu.pipeline_mode<synchronous>, transform_indices = @transform_19, window_bounds = array<i64: 256, 128>}, {pipeline_mode = #tpu.pipeline_mode<synchronous>, transform_indices = @transform_20, window_bounds = array<i64: 1, 128>}, {transform_indices = @transform_21, window_bounds = array<i64: 1, 8, 128>}]} {
    %c0 = arith.constant 0 : index
    %c0_0 = arith.constant 0 : index
    %c0_1 = arith.constant 0 : index
    %0 = vector.load %arg1[%c0, %c0_0, %c0_1] : memref<1x8x128xf32, #tpu.memory_space<vmem>>, vector<1x8x128xf32>
    %1 = vector.shape_cast %0 : vector<1x8x128xf32> to vector<8x128xf32>
    %c0_2 = arith.constant 0 : index
    %c0_3 = arith.constant 0 : index
    %c0_4 = arith.constant 0 : index
    %2 = vector.load %arg3[%c0_2, %c0_3, %c0_4] : memref<1x8x128xf32, #tpu.memory_space<vmem>>, vector<1x8x128xf32>
    %3 = vector.shape_cast %2 : vector<1x8x128xf32> to vector<8x128xf32>
    %c0_5 = arith.constant 0 : index
    %c0_6 = arith.constant 0 : index
    %4 = vector.load %arg16[%c0_5, %c0_6] : memref<3x128xf32, #tpu.memory_space<vmem>>, vector<3x128xf32>
    %c0_7 = arith.constant 0 : index
    %c0_8 = arith.constant 0 : index
    %5 = vector.load %arg17[%c0_7, %c0_8] : memref<3x128xf32, #tpu.memory_space<vmem>>, vector<3x128xf32>
    %c0_9 = arith.constant 0 : index
    %c0_10 = arith.constant 0 : index
    %6 = vector.load %arg2[%c0_9, %c0_10] : memref<8x128xf32, #tpu.memory_space<vmem>>, vector<8x128xf32>
    %7 = arith.addf %1, %6 : vector<8x128xf32>
    %8 = arith.truncf %7 : vector<8x128xf32> to vector<8x128xbf16>
    %9 = vector.shape_cast %8 : vector<8x128xbf16> to vector<1x8x128xbf16>
    %10 = vector.shape_cast %9 : vector<1x8x128xbf16> to vector<1x8x128xbf16>
    %11 = vector.broadcast %10 : vector<1x8x128xbf16> to vector<4x8x128xbf16>
    %c0_11 = arith.constant 0 : index
    %c0_12 = arith.constant 0 : index
    %c0_13 = arith.constant 0 : index
    %12 = vector.load %arg6[%c0_11, %c0_12, %c0_13] : memref<4x128x96xbf16, #tpu.memory_space<vmem>>, vector<4x128x96xbf16>
    "tpu.trace_start"() <{level = 10 : i32, message = "hsD,hDe->hse"}> : () -> ()
    %cst = arith.constant dense<0.000000e+00> : vector<4x8x96xf32>
    %13 = tpu.matmul %11, %12, %cst {dimension_numbers = #tpu.dot_dimension_numbers<[2], [1], [1], [2], [0, 0, 0, 1, 1, 2], [0], [0]>} : vector<4x8x128xbf16>, vector<4x128x96xbf16>, vector<4x8x96xf32> -> vector<4x8x96xf32>
    "tpu.trace_stop"() : () -> ()
    %c0_14 = arith.constant 0 : index
    %c0_15 = arith.constant 0 : index
    %c0_16 = arith.constant 0 : index
    %14 = vector.load %arg7[%c0_14, %c0_15, %c0_16] : memref<4x1x96xf32, #tpu.memory_space<vmem>>, vector<4x1x96xf32>
    %15 = vector.broadcast %14 : vector<4x1x96xf32> to vector<4x8x96xf32>
    %16 = arith.addf %13, %15 : vector<4x8x96xf32>
    %17 = vector.extract_strided_slice %16 {offsets = [0, 0, 0], sizes = [4, 8, 32], strides = [1, 1, 1]} : vector<4x8x96xf32> to vector<4x8x32xf32>
    %18 = vector.extract_strided_slice %16 {offsets = [0, 0, 32], sizes = [4, 8, 32], strides = [1, 1, 1]} : vector<4x8x96xf32> to vector<4x8x32xf32>
    %19 = vector.extract_strided_slice %16 {offsets = [0, 0, 64], sizes = [4, 8, 32], strides = [1, 1, 1]} : vector<4x8x96xf32> to vector<4x8x32xf32>
    %c0_17 = arith.constant 0 : index
    %c0_18 = arith.constant 0 : index
    %20 = vector.load %arg4[%c0_17, %c0_18] : memref<8x8xf32, #tpu.memory_space<vmem>>, vector<8x8xf32>
    %c0_19 = arith.constant 0 : index
    %c0_20 = arith.constant 0 : index
    %c0_21 = arith.constant 0 : index
    %21 = vector.load %arg8[%c0_19, %c0_20, %c0_21] : memref<4x32x128xbf16, #tpu.memory_space<vmem>>, vector<4x32x128xbf16>
    %c0_22 = arith.constant 0 : index
    %c0_23 = arith.constant 0 : index
    %22 = vector.load %arg9[%c0_22, %c0_23] : memref<1x128xf32, #tpu.memory_space<vmem>>, vector<1x128xf32>
    %23 = arith.truncf %17 : vector<4x8x32xf32> to vector<4x8x32xbf16>
    %24 = arith.truncf %18 : vector<4x8x32xf32> to vector<4x8x32xbf16>
    "tpu.trace_start"() <{level = 10 : i32, message = "hqd,hkd->hqk"}> : () -> ()
    %cst_24 = arith.constant dense<0.000000e+00> : vector<4x8x8xf32>
    %25 = tpu.matmul %23, %24, %cst_24 {dimension_numbers = #tpu.dot_dimension_numbers<[2], [2], [1], [1], [0, 0, 0, 1, 1, 1], [0], [0]>} : vector<4x8x32xbf16>, vector<4x8x32xbf16>, vector<4x8x8xf32> -> vector<4x8x8xf32>
    "tpu.trace_stop"() : () -> ()
    %26 = vector.shape_cast %20 : vector<8x8xf32> to vector<1x8x8xf32>
    %27 = vector.broadcast %26 : vector<1x8x8xf32> to vector<4x8x8xf32>
    %28 = arith.addf %25, %27 : vector<4x8x8xf32>
    %cst_25 = arith.constant dense<0xFF800000> : vector<4x8xf32>
    %29 = vector.multi_reduction <maximumf>, %28, %cst_25 [2] : vector<4x8x8xf32> to vector<4x8xf32>
    %30 = vector.shape_cast %29 : vector<4x8xf32> to vector<4x8x1xf32>
    %31 = vector.broadcast %30 : vector<4x8x1xf32> to vector<4x8x8xf32>
    %32 = arith.subf %28, %31 : vector<4x8x8xf32>
    %33 = math.exp %32 : vector<4x8x8xf32>
    %cst_26 = arith.constant dense<0.000000e+00> : vector<4x8xf32>
    %34 = vector.multi_reduction <add>, %33, %cst_26 [2] : vector<4x8x8xf32> to vector<4x8xf32>
    %35 = vector.shape_cast %34 : vector<4x8xf32> to vector<4x8x1xf32>
    %36 = tpu.reciprocal %35 {approx = true} : vector<4x8x1xf32> -> vector<4x8x1xf32>
    %37 = vector.broadcast %36 : vector<4x8x1xf32> to vector<4x8x8xf32>
    %38 = arith.mulf %33, %37 : vector<4x8x8xf32>
    %39 = arith.truncf %38 : vector<4x8x8xf32> to vector<4x8x8xbf16>
    %40 = arith.truncf %19 : vector<4x8x32xf32> to vector<4x8x32xbf16>
    "tpu.trace_start"() <{level = 10 : i32, message = "hqk,hkd->hqd"}> : () -> ()
    %cst_27 = arith.constant dense<0.000000e+00> : vector<4x8x32xf32>
    %41 = tpu.matmul %39, %40, %cst_27 {dimension_numbers = #tpu.dot_dimension_numbers<[2], [1], [1], [2], [0, 0, 0, 1, 1, 2], [0], [0]>} : vector<4x8x8xbf16>, vector<4x8x32xbf16>, vector<4x8x32xf32> -> vector<4x8x32xf32>
    "tpu.trace_stop"() : () -> ()
    %42 = arith.truncf %41 : vector<4x8x32xf32> to vector<4x8x32xbf16>
    "tpu.trace_start"() <{level = 10 : i32, message = "hqd,hdD->hqD"}> : () -> ()
    %cst_28 = arith.constant dense<0.000000e+00> : vector<4x8x128xf32>
    %43 = tpu.matmul %42, %21, %cst_28 {dimension_numbers = #tpu.dot_dimension_numbers<[2], [1], [1], [2], [0, 0, 0, 1, 1, 2], [0], [0]>} : vector<4x8x32xbf16>, vector<4x32x128xbf16>, vector<4x8x128xf32> -> vector<4x8x128xf32>
    "tpu.trace_stop"() : () -> ()
    %44 = vector.extract_strided_slice %43 {offsets = [0, 0, 0], sizes = [1, 8, 128], strides = [1, 1, 1]} : vector<4x8x128xf32> to vector<1x8x128xf32>
    %45 = vector.shape_cast %44 : vector<1x8x128xf32> to vector<8x128xf32>
    %46 = vector.extract_strided_slice %43 {offsets = [1, 0, 0], sizes = [1, 8, 128], strides = [1, 1, 1]} : vector<4x8x128xf32> to vector<1x8x128xf32>
    %47 = vector.shape_cast %46 : vector<1x8x128xf32> to vector<8x128xf32>
    %48 = arith.addf %45, %47 : vector<8x128xf32>
    %49 = vector.extract_strided_slice %43 {offsets = [2, 0, 0], sizes = [1, 8, 128], strides = [1, 1, 1]} : vector<4x8x128xf32> to vector<1x8x128xf32>
    %50 = vector.shape_cast %49 : vector<1x8x128xf32> to vector<8x128xf32>
    %51 = arith.addf %48, %50 : vector<8x128xf32>
    %52 = vector.extract_strided_slice %43 {offsets = [3, 0, 0], sizes = [1, 8, 128], strides = [1, 1, 1]} : vector<4x8x128xf32> to vector<1x8x128xf32>
    %53 = vector.shape_cast %52 : vector<1x8x128xf32> to vector<8x128xf32>
    %54 = arith.addf %51, %53 : vector<8x128xf32>
    %55 = vector.broadcast %22 : vector<1x128xf32> to vector<8x128xf32>
    %56 = arith.addf %54, %55 : vector<8x128xf32>
    %57 = arith.addf %56, %1 : vector<8x128xf32>
    %58 = vector.extract_strided_slice %4 {offsets = [0, 0], sizes = [1, 128], strides = [1, 1]} : vector<3x128xf32> to vector<1x128xf32>
    %59 = vector.shape_cast %58 : vector<1x128xf32> to vector<128xf32>
    %60 = vector.extract_strided_slice %5 {offsets = [0, 0], sizes = [1, 128], strides = [1, 1]} : vector<3x128xf32> to vector<1x128xf32>
    %61 = vector.shape_cast %60 : vector<1x128xf32> to vector<128xf32>
    %cst_29 = arith.constant dense<0.000000e+00> : vector<8xf32>
    %62 = vector.multi_reduction <add>, %57, %cst_29 [1] : vector<8x128xf32> to vector<8xf32>
    %63 = vector.shape_cast %62 : vector<8xf32> to vector<8x1xf32>
    %cst_30 = arith.constant 1.280000e+02 : f32
    %64 = vector.broadcast %cst_30 : f32 to vector<8x1xf32>
    %65 = arith.divf %63, %64 : vector<8x1xf32>
    %66 = vector.broadcast %65 : vector<8x1xf32> to vector<8x128xf32>
    %67 = arith.subf %57, %66 : vector<8x128xf32>
    %68 = arith.mulf %67, %67 : vector<8x128xf32>
    %cst_31 = arith.constant dense<0.000000e+00> : vector<8xf32>
    %69 = vector.multi_reduction <add>, %68, %cst_31 [1] : vector<8x128xf32> to vector<8xf32>
    %70 = vector.shape_cast %69 : vector<8xf32> to vector<8x1xf32>
    %cst_32 = arith.constant 1.280000e+02 : f32
    %71 = vector.broadcast %cst_32 : f32 to vector<8x1xf32>
    %72 = arith.divf %70, %71 : vector<8x1xf32>
    %73 = vector.broadcast %65 : vector<8x1xf32> to vector<8x128xf32>
    %74 = arith.subf %57, %73 : vector<8x128xf32>
    %cst_33 = arith.constant 9.99999974E-6 : f32
    %75 = vector.broadcast %cst_33 : f32 to vector<8x1xf32>
    %76 = arith.addf %72, %75 : vector<8x1xf32>
    %77 = math.rsqrt %76 : vector<8x1xf32>
    %78 = vector.broadcast %77 : vector<8x1xf32> to vector<8x128xf32>
    %79 = arith.mulf %74, %78 : vector<8x128xf32>
    %80 = vector.shape_cast %59 : vector<128xf32> to vector<1x128xf32>
    %81 = vector.broadcast %80 : vector<1x128xf32> to vector<8x128xf32>
    %82 = arith.mulf %79, %81 : vector<8x128xf32>
    %83 = vector.shape_cast %61 : vector<128xf32> to vector<1x128xf32>
    %84 = vector.broadcast %83 : vector<1x128xf32> to vector<8x128xf32>
    %85 = arith.addf %82, %84 : vector<8x128xf32>
    %86 = arith.truncf %85 : vector<8x128xf32> to vector<8x128xbf16>
    %87 = vector.shape_cast %86 : vector<8x128xbf16> to vector<1x8x128xbf16>
    %88 = vector.shape_cast %87 : vector<1x8x128xbf16> to vector<1x8x128xbf16>
    %89 = vector.broadcast %88 : vector<1x8x128xbf16> to vector<4x8x128xbf16>
    %90 = arith.truncf %3 : vector<8x128xf32> to vector<8x128xbf16>
    %91 = vector.shape_cast %90 : vector<8x128xbf16> to vector<1x8x128xbf16>
    %92 = vector.shape_cast %91 : vector<1x8x128xbf16> to vector<1x8x128xbf16>
    %93 = vector.broadcast %92 : vector<1x8x128xbf16> to vector<4x8x128xbf16>
    %c0_34 = arith.constant 0 : index
    %c0_35 = arith.constant 0 : index
    %c0_36 = arith.constant 0 : index
    %94 = vector.load %arg10[%c0_34, %c0_35, %c0_36] : memref<4x128x32xbf16, #tpu.memory_space<vmem>>, vector<4x128x32xbf16>
    "tpu.trace_start"() <{level = 10 : i32, message = "hsD,hDd->hsd"}> : () -> ()
    %cst_37 = arith.constant dense<0.000000e+00> : vector<4x8x32xf32>
    %95 = tpu.matmul %89, %94, %cst_37 {dimension_numbers = #tpu.dot_dimension_numbers<[2], [1], [1], [2], [0, 0, 0, 1, 1, 2], [0], [0]>} : vector<4x8x128xbf16>, vector<4x128x32xbf16>, vector<4x8x32xf32> -> vector<4x8x32xf32>
    "tpu.trace_stop"() : () -> ()
    %c0_38 = arith.constant 0 : index
    %c0_39 = arith.constant 0 : index
    %c0_40 = arith.constant 0 : index
    %96 = vector.load %arg11[%c0_38, %c0_39, %c0_40] : memref<4x1x32xf32, #tpu.memory_space<vmem>>, vector<4x1x32xf32>
    %97 = vector.broadcast %96 : vector<4x1x32xf32> to vector<4x8x32xf32>
    %98 = arith.addf %95, %97 : vector<4x8x32xf32>
    %c0_41 = arith.constant 0 : index
    %c0_42 = arith.constant 0 : index
    %c0_43 = arith.constant 0 : index
    %99 = vector.load %arg12[%c0_41, %c0_42, %c0_43] : memref<4x128x64xbf16, #tpu.memory_space<vmem>>, vector<4x128x64xbf16>
    "tpu.trace_start"() <{level = 10 : i32, message = "hsD,hDe->hse"}> : () -> ()
    %cst_44 = arith.constant dense<0.000000e+00> : vector<4x8x64xf32>
    %100 = tpu.matmul %93, %99, %cst_44 {dimension_numbers = #tpu.dot_dimension_numbers<[2], [1], [1], [2], [0, 0, 0, 1, 1, 2], [0], [0]>} : vector<4x8x128xbf16>, vector<4x128x64xbf16>, vector<4x8x64xf32> -> vector<4x8x64xf32>
    "tpu.trace_stop"() : () -> ()
    %c0_45 = arith.constant 0 : index
    %c0_46 = arith.constant 0 : index
    %c0_47 = arith.constant 0 : index
    %101 = vector.load %arg13[%c0_45, %c0_46, %c0_47] : memref<4x1x64xf32, #tpu.memory_space<vmem>>, vector<4x1x64xf32>
    %102 = vector.broadcast %101 : vector<4x1x64xf32> to vector<4x8x64xf32>
    %103 = arith.addf %100, %102 : vector<4x8x64xf32>
    %104 = vector.extract_strided_slice %103 {offsets = [0, 0, 0], sizes = [4, 8, 32], strides = [1, 1, 1]} : vector<4x8x64xf32> to vector<4x8x32xf32>
    %105 = vector.extract_strided_slice %103 {offsets = [0, 0, 32], sizes = [4, 8, 32], strides = [1, 1, 1]} : vector<4x8x64xf32> to vector<4x8x32xf32>
    %c0_48 = arith.constant 0 : index
    %c0_49 = arith.constant 0 : index
    %106 = vector.load %arg5[%c0_48, %c0_49] : memref<8x8xf32, #tpu.memory_space<vmem>>, vector<8x8xf32>
    %c0_50 = arith.constant 0 : index
    %c0_51 = arith.constant 0 : index
    %c0_52 = arith.constant 0 : index
    %107 = vector.load %arg14[%c0_50, %c0_51, %c0_52] : memref<4x32x128xbf16, #tpu.memory_space<vmem>>, vector<4x32x128xbf16>
    %c0_53 = arith.constant 0 : index
    %c0_54 = arith.constant 0 : index
    %108 = vector.load %arg15[%c0_53, %c0_54] : memref<1x128xf32, #tpu.memory_space<vmem>>, vector<1x128xf32>
    %109 = arith.truncf %98 : vector<4x8x32xf32> to vector<4x8x32xbf16>
    %110 = arith.truncf %104 : vector<4x8x32xf32> to vector<4x8x32xbf16>
    "tpu.trace_start"() <{level = 10 : i32, message = "hqd,hkd->hqk"}> : () -> ()
    %cst_55 = arith.constant dense<0.000000e+00> : vector<4x8x8xf32>
    %111 = tpu.matmul %109, %110, %cst_55 {dimension_numbers = #tpu.dot_dimension_numbers<[2], [2], [1], [1], [0, 0, 0, 1, 1, 1], [0], [0]>} : vector<4x8x32xbf16>, vector<4x8x32xbf16>, vector<4x8x8xf32> -> vector<4x8x8xf32>
    "tpu.trace_stop"() : () -> ()
    %112 = vector.shape_cast %106 : vector<8x8xf32> to vector<1x8x8xf32>
    %113 = vector.broadcast %112 : vector<1x8x8xf32> to vector<4x8x8xf32>
    %114 = arith.addf %111, %113 : vector<4x8x8xf32>
    %cst_56 = arith.constant dense<0xFF800000> : vector<4x8xf32>
    %115 = vector.multi_reduction <maximumf>, %114, %cst_56 [2] : vector<4x8x8xf32> to vector<4x8xf32>
    %116 = vector.shape_cast %115 : vector<4x8xf32> to vector<4x8x1xf32>
    %117 = vector.broadcast %116 : vector<4x8x1xf32> to vector<4x8x8xf32>
    %118 = arith.subf %114, %117 : vector<4x8x8xf32>
    %119 = math.exp %118 : vector<4x8x8xf32>
    %cst_57 = arith.constant dense<0.000000e+00> : vector<4x8xf32>
    %120 = vector.multi_reduction <add>, %119, %cst_57 [2] : vector<4x8x8xf32> to vector<4x8xf32>
    %121 = vector.shape_cast %120 : vector<4x8xf32> to vector<4x8x1xf32>
    %122 = tpu.reciprocal %121 {approx = true} : vector<4x8x1xf32> -> vector<4x8x1xf32>
    %123 = vector.broadcast %122 : vector<4x8x1xf32> to vector<4x8x8xf32>
    %124 = arith.mulf %119, %123 : vector<4x8x8xf32>
    %125 = arith.truncf %124 : vector<4x8x8xf32> to vector<4x8x8xbf16>
    %126 = arith.truncf %105 : vector<4x8x32xf32> to vector<4x8x32xbf16>
    "tpu.trace_start"() <{level = 10 : i32, message = "hqk,hkd->hqd"}> : () -> ()
    %cst_58 = arith.constant dense<0.000000e+00> : vector<4x8x32xf32>
    %127 = tpu.matmul %125, %126, %cst_58 {dimension_numbers = #tpu.dot_dimension_numbers<[2], [1], [1], [2], [0, 0, 0, 1, 1, 2], [0], [0]>} : vector<4x8x8xbf16>, vector<4x8x32xbf16>, vector<4x8x32xf32> -> vector<4x8x32xf32>
    "tpu.trace_stop"() : () -> ()
    %128 = arith.truncf %127 : vector<4x8x32xf32> to vector<4x8x32xbf16>
    "tpu.trace_start"() <{level = 10 : i32, message = "hqd,hdD->hqD"}> : () -> ()
    %cst_59 = arith.constant dense<0.000000e+00> : vector<4x8x128xf32>
    %129 = tpu.matmul %128, %107, %cst_59 {dimension_numbers = #tpu.dot_dimension_numbers<[2], [1], [1], [2], [0, 0, 0, 1, 1, 2], [0], [0]>} : vector<4x8x32xbf16>, vector<4x32x128xbf16>, vector<4x8x128xf32> -> vector<4x8x128xf32>
    "tpu.trace_stop"() : () -> ()
    %130 = vector.extract_strided_slice %129 {offsets = [0, 0, 0], sizes = [1, 8, 128], strides = [1, 1, 1]} : vector<4x8x128xf32> to vector<1x8x128xf32>
    %131 = vector.shape_cast %130 : vector<1x8x128xf32> to vector<8x128xf32>
    %132 = vector.extract_strided_slice %129 {offsets = [1, 0, 0], sizes = [1, 8, 128], strides = [1, 1, 1]} : vector<4x8x128xf32> to vector<1x8x128xf32>
    %133 = vector.shape_cast %132 : vector<1x8x128xf32> to vector<8x128xf32>
    %134 = arith.addf %131, %133 : vector<8x128xf32>
    %135 = vector.extract_strided_slice %129 {offsets = [2, 0, 0], sizes = [1, 8, 128], strides = [1, 1, 1]} : vector<4x8x128xf32> to vector<1x8x128xf32>
    %136 = vector.shape_cast %135 : vector<1x8x128xf32> to vector<8x128xf32>
    %137 = arith.addf %134, %136 : vector<8x128xf32>
    %138 = vector.extract_strided_slice %129 {offsets = [3, 0, 0], sizes = [1, 8, 128], strides = [1, 1, 1]} : vector<4x8x128xf32> to vector<1x8x128xf32>
    %139 = vector.shape_cast %138 : vector<1x8x128xf32> to vector<8x128xf32>
    %140 = arith.addf %137, %139 : vector<8x128xf32>
    %141 = vector.broadcast %108 : vector<1x128xf32> to vector<8x128xf32>
    %142 = arith.addf %140, %141 : vector<8x128xf32>
    %143 = arith.addf %142, %85 : vector<8x128xf32>
    %144 = vector.extract_strided_slice %4 {offsets = [1, 0], sizes = [1, 128], strides = [1, 1]} : vector<3x128xf32> to vector<1x128xf32>
    %145 = vector.shape_cast %144 : vector<1x128xf32> to vector<128xf32>
    %146 = vector.extract_strided_slice %5 {offsets = [1, 0], sizes = [1, 128], strides = [1, 1]} : vector<3x128xf32> to vector<1x128xf32>
    %147 = vector.shape_cast %146 : vector<1x128xf32> to vector<128xf32>
    %cst_60 = arith.constant dense<0.000000e+00> : vector<8xf32>
    %148 = vector.multi_reduction <add>, %143, %cst_60 [1] : vector<8x128xf32> to vector<8xf32>
    %149 = vector.shape_cast %148 : vector<8xf32> to vector<8x1xf32>
    %cst_61 = arith.constant 1.280000e+02 : f32
    %150 = vector.broadcast %cst_61 : f32 to vector<8x1xf32>
    %151 = arith.divf %149, %150 : vector<8x1xf32>
    %152 = vector.broadcast %151 : vector<8x1xf32> to vector<8x128xf32>
    %153 = arith.subf %143, %152 : vector<8x128xf32>
    %154 = arith.mulf %153, %153 : vector<8x128xf32>
    %cst_62 = arith.constant dense<0.000000e+00> : vector<8xf32>
    %155 = vector.multi_reduction <add>, %154, %cst_62 [1] : vector<8x128xf32> to vector<8xf32>
    %156 = vector.shape_cast %155 : vector<8xf32> to vector<8x1xf32>
    %cst_63 = arith.constant 1.280000e+02 : f32
    %157 = vector.broadcast %cst_63 : f32 to vector<8x1xf32>
    %158 = arith.divf %156, %157 : vector<8x1xf32>
    %159 = vector.broadcast %151 : vector<8x1xf32> to vector<8x128xf32>
    %160 = arith.subf %143, %159 : vector<8x128xf32>
    %cst_64 = arith.constant 9.99999974E-6 : f32
    %161 = vector.broadcast %cst_64 : f32 to vector<8x1xf32>
    %162 = arith.addf %158, %161 : vector<8x1xf32>
    %163 = math.rsqrt %162 : vector<8x1xf32>
    %164 = vector.broadcast %163 : vector<8x1xf32> to vector<8x128xf32>
    %165 = arith.mulf %160, %164 : vector<8x128xf32>
    %166 = vector.shape_cast %145 : vector<128xf32> to vector<1x128xf32>
    %167 = vector.broadcast %166 : vector<1x128xf32> to vector<8x128xf32>
    %168 = arith.mulf %165, %167 : vector<8x128xf32>
    %169 = vector.shape_cast %147 : vector<128xf32> to vector<1x128xf32>
    %170 = vector.broadcast %169 : vector<1x128xf32> to vector<8x128xf32>
    %171 = arith.addf %168, %170 : vector<8x128xf32>
    %172 = arith.truncf %171 : vector<8x128xf32> to vector<8x128xbf16>
    %c0_65 = arith.constant 0 : index
    %c0_66 = arith.constant 0 : index
    %173 = vector.load %arg18[%c0_65, %c0_66] : memref<128x256xbf16, #tpu.memory_space<vmem>>, vector<128x256xbf16>
    %cst_67 = arith.constant dense<0.000000e+00> : vector<8x256xf32>
    %174 = tpu.matmul %172, %173, %cst_67 {dimension_numbers = #tpu.dot_dimension_numbers<[1], [0], [0], [1], [0, 0, 1, 1], [], []>} : vector<8x128xbf16>, vector<128x256xbf16>, vector<8x256xf32> -> vector<8x256xf32>
    %c0_68 = arith.constant 0 : index
    %c0_69 = arith.constant 0 : index
    %175 = vector.load %arg19[%c0_68, %c0_69] : memref<1x256xf32, #tpu.memory_space<vmem>>, vector<1x256xf32>
    %176 = vector.broadcast %175 : vector<1x256xf32> to vector<8x256xf32>
    %177 = arith.addf %174, %176 : vector<8x256xf32>
    %cst_70 = arith.constant 0.000000e+00 : f32
    %178 = vector.broadcast %cst_70 : f32 to vector<8x256xf32>
    %179 = arith.maximumf %177, %178 : vector<8x256xf32>
    %180 = arith.truncf %179 : vector<8x256xf32> to vector<8x256xbf16>
    %c0_71 = arith.constant 0 : index
    %c0_72 = arith.constant 0 : index
    %181 = vector.load %arg20[%c0_71, %c0_72] : memref<256x128xbf16, #tpu.memory_space<vmem>>, vector<256x128xbf16>
    %cst_73 = arith.constant dense<0.000000e+00> : vector<8x128xf32>
    %182 = tpu.matmul %180, %181, %cst_73 {dimension_numbers = #tpu.dot_dimension_numbers<[1], [0], [0], [1], [0, 0, 1, 1], [], []>} : vector<8x256xbf16>, vector<256x128xbf16>, vector<8x128xf32> -> vector<8x128xf32>
    %c0_74 = arith.constant 0 : index
    %c0_75 = arith.constant 0 : index
    %183 = vector.load %arg21[%c0_74, %c0_75] : memref<1x128xf32, #tpu.memory_space<vmem>>, vector<1x128xf32>
    %184 = vector.broadcast %183 : vector<1x128xf32> to vector<8x128xf32>
    %185 = arith.addf %182, %184 : vector<8x128xf32>
    %186 = arith.addf %185, %171 : vector<8x128xf32>
    %187 = vector.extract_strided_slice %4 {offsets = [2, 0], sizes = [1, 128], strides = [1, 1]} : vector<3x128xf32> to vector<1x128xf32>
    %188 = vector.shape_cast %187 : vector<1x128xf32> to vector<128xf32>
    %189 = vector.extract_strided_slice %5 {offsets = [2, 0], sizes = [1, 128], strides = [1, 1]} : vector<3x128xf32> to vector<1x128xf32>
    %190 = vector.shape_cast %189 : vector<1x128xf32> to vector<128xf32>
    %cst_76 = arith.constant dense<0.000000e+00> : vector<8xf32>
    %191 = vector.multi_reduction <add>, %186, %cst_76 [1] : vector<8x128xf32> to vector<8xf32>
    %192 = vector.shape_cast %191 : vector<8xf32> to vector<8x1xf32>
    %cst_77 = arith.constant 1.280000e+02 : f32
    %193 = vector.broadcast %cst_77 : f32 to vector<8x1xf32>
    %194 = arith.divf %192, %193 : vector<8x1xf32>
    %195 = vector.broadcast %194 : vector<8x1xf32> to vector<8x128xf32>
    %196 = arith.subf %186, %195 : vector<8x128xf32>
    %197 = arith.mulf %196, %196 : vector<8x128xf32>
    %cst_78 = arith.constant dense<0.000000e+00> : vector<8xf32>
    %198 = vector.multi_reduction <add>, %197, %cst_78 [1] : vector<8x128xf32> to vector<8xf32>
    %199 = vector.shape_cast %198 : vector<8xf32> to vector<8x1xf32>
    %cst_79 = arith.constant 1.280000e+02 : f32
    %200 = vector.broadcast %cst_79 : f32 to vector<8x1xf32>
    %201 = arith.divf %199, %200 : vector<8x1xf32>
    %202 = vector.broadcast %194 : vector<8x1xf32> to vector<8x128xf32>
    %203 = arith.subf %186, %202 : vector<8x128xf32>
    %cst_80 = arith.constant 9.99999974E-6 : f32
    %204 = vector.broadcast %cst_80 : f32 to vector<8x1xf32>
    %205 = arith.addf %201, %204 : vector<8x1xf32>
    %206 = math.rsqrt %205 : vector<8x1xf32>
    %207 = vector.broadcast %206 : vector<8x1xf32> to vector<8x128xf32>
    %208 = arith.mulf %203, %207 : vector<8x128xf32>
    %209 = vector.shape_cast %188 : vector<128xf32> to vector<1x128xf32>
    %210 = vector.broadcast %209 : vector<1x128xf32> to vector<8x128xf32>
    %211 = arith.mulf %208, %210 : vector<8x128xf32>
    %212 = vector.shape_cast %190 : vector<128xf32> to vector<1x128xf32>
    %213 = vector.broadcast %212 : vector<1x128xf32> to vector<8x128xf32>
    %214 = arith.addf %211, %213 : vector<8x128xf32>
    %c0_81 = arith.constant 0 : index
    %c0_82 = arith.constant 0 : index
    %c0_83 = arith.constant 0 : index
    %215 = vector.load %arg22[%c0_81, %c0_82, %c0_83] : memref<1x8x128xf32, #tpu.memory_space<vmem>>, vector<1x8x128xf32>
    %216 = vector.shape_cast %215 : vector<1x8x128xf32> to vector<8x128xf32>
    %217 = vector.shape_cast %214 : vector<8x128xf32> to vector<1x8x128xf32>
    tpu.vector_store %arg22[%c0_81, %c0_82, %c0_83], %217 {strides = array<i32>} : memref<1x8x128xf32, #tpu.memory_space<vmem>>, vector<1x8x128xf32>,
    return
  }
  func.func @transform_0(%arg0: i32) -> (i32, i32, i32) {
    %c0_i32 = arith.constant 0 : i32
    %c0_i32_0 = arith.constant 0 : i32
    %c0_i32_1 = arith.constant 0 : i32
    return %arg0, %c0_i32, %c0_i32_0 : i32, i32, i32
  }
  func.func @transform_1(%arg0: i32) -> (i32, i32) {
    %c0_i32 = arith.constant 0 : i32
    %c0_i32_0 = arith.constant 0 : i32
    %c0_i32_1 = arith.constant 0 : i32
    return %c0_i32, %c0_i32_0 : i32, i32
  }
  func.func @transform_2(%arg0: i32) -> (i32, i32, i32) {
    %c0_i32 = arith.constant 0 : i32
    %c0_i32_0 = arith.constant 0 : i32
    %c0_i32_1 = arith.constant 0 : i32
    return %arg0, %c0_i32, %c0_i32_0 : i32, i32, i32
  }
  func.func @transform_3(%arg0: i32) -> (i32, i32) {
    %c0_i32 = arith.constant 0 : i32
    %c0_i32_0 = arith.constant 0 : i32
    %c0_i32_1 = arith.constant 0 : i32
    return %c0_i32, %c0_i32_0 : i32, i32
  }
  func.func @transform_4(%arg0: i32) -> (i32, i32) {
    %c0_i32 = arith.constant 0 : i32
    %c0_i32_0 = arith.constant 0 : i32
    %c0_i32_1 = arith.constant 0 : i32
    return %c0_i32, %c0_i32_0 : i32, i32
  }
  func.func @transform_5(%arg0: i32) -> (i32, i32, i32) {
    %c0_i32 = arith.constant 0 : i32
    %c0_i32_0 = arith.constant 0 : i32
    %c0_i32_1 = arith.constant 0 : i32
    %c0_i32_2 = arith.constant 0 : i32
    return %c0_i32, %c0_i32_0, %c0_i32_1 : i32, i32, i32
  }
  func.func @transform_6(%arg0: i32) -> (i32, i32, i32) {
    %c0_i32 = arith.constant 0 : i32
    %c0_i32_0 = arith.constant 0 : i32
    %c0_i32_1 = arith.constant 0 : i32
    %c0_i32_2 = arith.constant 0 : i32
    return %c0_i32, %c0_i32_0, %c0_i32_1 : i32, i32, i32
  }
  func.func @transform_7(%arg0: i32) -> (i32, i32, i32) {
    %c0_i32 = arith.constant 0 : i32
    %c0_i32_0 = arith.constant 0 : i32
    %c0_i32_1 = arith.constant 0 : i32
    %c0_i32_2 = arith.constant 0 : i32
    return %c0_i32, %c0_i32_0, %c0_i32_1 : i32, i32, i32
  }
  func.func @transform_8(%arg0: i32) -> (i32, i32) {
    %c0_i32 = arith.constant 0 : i32
    %c0_i32_0 = arith.constant 0 : i32
    %c0_i32_1 = arith.constant 0 : i32
    return %c0_i32, %c0_i32_0 : i32, i32
  }
  func.func @transform_9(%arg0: i32) -> (i32, i32, i32) {
    %c0_i32 = arith.constant 0 : i32
    %c0_i32_0 = arith.constant 0 : i32
    %c0_i32_1 = arith.constant 0 : i32
    %c0_i32_2 = arith.constant 0 : i32
    return %c0_i32, %c0_i32_0, %c0_i32_1 : i32, i32, i32
  }
  func.func @transform_10(%arg0: i32) -> (i32, i32, i32) {
    %c0_i32 = arith.constant 0 : i32
    %c0_i32_0 = arith.constant 0 : i32
    %c0_i32_1 = arith.constant 0 : i32
    %c0_i32_2 = arith.constant 0 : i32
    return %c0_i32, %c0_i32_0, %c0_i32_1 : i32, i32, i32
  }
  func.func @transform_11(%arg0: i32) -> (i32, i32, i32) {
    %c0_i32 = arith.constant 0 : i32
    %c0_i32_0 = arith.constant 0 : i32
    %c0_i32_1 = arith.constant 0 : i32
    %c0_i32_2 = arith.constant 0 : i32
    return %c0_i32, %c0_i32_0, %c0_i32_1 : i32, i32, i32
  }
  func.func @transform_12(%arg0: i32) -> (i32, i32, i32) {
    %c0_i32 = arith.constant 0 : i32
    %c0_i32_0 = arith.constant 0 : i32
    %c0_i32_1 = arith.constant 0 : i32
    %c0_i32_2 = arith.constant 0 : i32
    return %c0_i32, %c0_i32_0, %c0_i32_1 : i32, i32, i32
  }
  func.func @transform_13(%arg0: i32) -> (i32, i32, i32) {
    %c0_i32 = arith.constant 0 : i32
    %c0_i32_0 = arith.constant 0 : i32
    %c0_i32_1 = arith.constant 0 : i32
    %c0_i32_2 = arith.constant 0 : i32
    return %c0_i32, %c0_i32_0, %c0_i32_1 : i32, i32, i32
  }
  func.func @transform_14(%arg0: i32) -> (i32, i32) {
    %c0_i32 = arith.constant 0 : i32
    %c0_i32_0 = arith.constant 0 : i32
    %c0_i32_1 = arith.constant 0 : i32
    return %c0_i32, %c0_i32_0 : i32, i32
  }
  func.func @transform_15(%arg0: i32) -> (i32, i32) {
    %c0_i32 = arith.constant 0 : i32
    %c0_i32_0 = arith.constant 0 : i32
    %c0_i32_1 = arith.constant 0 : i32
    return %c0_i32, %c0_i32_0 : i32, i32
  }
  func.func @transform_16(%arg0: i32) -> (i32, i32) {
    %c0_i32 = arith.constant 0 : i32
    %c0_i32_0 = arith.constant 0 : i32
    %c0_i32_1 = arith.constant 0 : i32
    return %c0_i32, %c0_i32_0 : i32, i32
  }
  func.func @transform_17(%arg0: i32) -> (i32, i32) {
    %c0_i32 = arith.constant 0 : i32
    %c0_i32_0 = arith.constant 0 : i32
    %c0_i32_1 = arith.constant 0 : i32
    return %c0_i32, %c0_i32_0 : i32, i32
  }
  func.func @transform_18(%arg0: i32) -> (i32, i32) {
    %c0_i32 = arith.constant 0 : i32
    %c0_i32_0 = arith.constant 0 : i32
    %c0_i32_1 = arith.constant 0 : i32
    return %c0_i32, %c0_i32_0 : i32, i32
  }
  func.func @transform_19(%arg0: i32) -> (i32, i32) {
    %c0_i32 = arith.constant 0 : i32
    %c0_i32_0 = arith.constant 0 : i32
    %c0_i32_1 = arith.constant 0 : i32
    return %c0_i32, %c0_i32_0 : i32, i32
  }
  func.func @transform_20(%arg0: i32) -> (i32, i32) {
    %c0_i32 = arith.constant 0 : i32
    %c0_i32_0 = arith.constant 0 : i32
    %c0_i32_1 = arith.constant 0 : i32
    return %c0_i32, %c0_i32_0 : i32, i32
  }
  func.func @transform_21(%arg0: i32) -> (i32, i32, i32) {
    %c0_i32 = arith.constant 0 : i32
    %c0_i32_0 = arith.constant 0 : i32
    %c0_i32_1 = arith.constant 0 : i32
    return %arg0, %c0_i32, %c0_i32_0 : i32, i32, i32
  }
}

</mosaic_0001>

<bundles_post_ra>
// kernel: decoder_layer.1
= control target key start
LH: loop header
LB: loop body
LE: loop exit
PB: predicated region body
PF: predicated region fallthrough
CT: control target
= control target key end

     0   :  { %s6015_s0 = inlined_call_operand.vmem [shape: f32[2,8,128], index: 0, kind: input, shape index: {}]   ;;  %s6016_s1 = inlined_call_operand.vmem [shape: f32[8,128], index: 1, kind: input, shape index: {}]   ;;  %s6017_s2 = inlined_call_operand.vmem [shape: f32[2,8,128], index: 2, kind: input, shape index: {}]   ;;  %s6018_s3 = inlined_call_operand.vmem [shape: f32[8,8], index: 3, kind: input, shape index: {}]   ;;  %s6019_s4 = inlined_call_operand.vmem [shape: f32[8,8], index: 4, kind: input, shape index: {}]   ;;  %s6020_s5 = inlined_call_operand.vmem [shape: bf16[4,128,96], index: 5, kind: input, shape index: {}]   ;;  %s6021_s6 = inlined_call_operand.vmem [shape: f32[4,1,96], index: 6, kind: input, shape index: {}]   ;;  %s6022_s7 = inlined_call_operand.vmem [shape: bf16[4,32,128], index: 7, kind: input, shape index: {}]   ;;  %s6023_s8 = inlined_call_operand.vmem [shape: f32[1,128], index: 8, kind: input, shape index: {}]   ;;  %s6024_s9 = inlined_call_operand.vmem [shape: bf16[4,128,32], index: 9, kind: input, shape index: {}]   ;;  %s6025_s10 = inlined_call_operand.vmem [shape: f32[4,1,32], index: 10, kind: input, shape index: {}]   ;;  %s6026_s11 = inlined_call_operand.vmem [shape: bf16[4,128,64], index: 11, kind: input, shape index: {}]   ;;  %s6027_s12 = inlined_call_operand.vmem [shape: f32[4,1,64], index: 12, kind: input, shape index: {}]   ;;  %s6028_s13 = inlined_call_operand.vmem [shape: bf16[4,32,128], index: 13, kind: input, shape index: {}]   ;;  %s6029_s14 = inlined_call_operand.vmem [shape: f32[1,128], index: 14, kind: input, shape index: {}]   ;;  %s6030_s15 = inlined_call_operand.vmem [shape: f32[3,128], index: 15, kind: input, shape index: {}]   ;;  %s6031_s16 = inlined_call_operand.vmem [shape: f32[3,128], index: 16, kind: input, shape index: {}]   ;;  %s6032_s17 = inlined_call_operand.vmem [shape: bf16[128,256], index: 17, kind: input, shape index: {}]   ;;  %s6033_s18 = inlined_call_operand.vmem [shape: f32[1,256], index: 18, kind: input, shape index: {}]   ;;  %s6034_s19 = inlined_call_operand.vmem [shape: bf16[256,128], index: 19, kind: input, shape index: {}]   ;;  %s6035_s20 = inlined_call_operand.vmem [shape: f32[1,128], index: 20, kind: input, shape index: {}]   ;;  %s6036_s21 = inlined_call_operand.hbm [shape: f32[2,8,128], index: 21, kind: output, shape index: {}]  }
   0x1   :  { %6047 = sst [smem:[#allocation11_spill]] %s6015_s0 }
   0x2   :  { %6048 = sst [smem:[#allocation12_spill]] %s6016_s1 }
   0x3   :  { %6049 = sst [smem:[#allocation13_spill]] %s6017_s2 }
   0x4   :  { %6050 = sst [smem:[#allocation14_spill]] %s6018_s3 }
   0x5   :  { %6051 = sst [smem:[#allocation15_spill]] %s6019_s4 }
   0x6   :  { %6052 = sst [smem:[#allocation16_spill]] %s6020_s5 }
   0x7   :  { %6053 = sst [smem:[#allocation17_spill]] %s6021_s6 }
   0x8   :  { %6054 = sst [smem:[#allocation18_spill]] %s6022_s7 }
   0x9   :  { %6055 = sst [smem:[#allocation19_spill]] %s6036_s21 }
   0xa   :  { %26 = vsyncpa [#allocation3], 0 }
   0xb   :  { %28 = vsyncpa [#allocation3 + $0x1], 0  ;;  %s5073_s2 = smov 0   ;;  %s5075_s25 = smov 0  }
   0xc   :  { %s5077_s26 = smov 0   ;;  %s5079_s27 = smov 0  }
   0xd LB: > { %6056 = sst [smem:[#allocation5_spill]] %s4943_s2  ;;  %s5094_s3 = sadd.s32 4294967295, %s4955_s27   ;;  %s4955_s27 = sphi %s5079_s27, %s6078_s27   ;;  %s4951_s26 = sphi %s5077_s26, %s6080_s26   ;;  %s4947_s25 = sphi %s5075_s25, %s6082_s25   ;;  %s4943_s2 = sphi %s5073_s2, %s6081_s2  }
   0xe   : > { %6057 = sst [smem:[#allocation6_spill]] %s4951_s26  ;;  %s3876_s28 = sadd.s32 4294967294, %s4955_s27  }
   0xf   : > { %6058 = sst [smem:[#allocation7_spill]] %s4955_s27  ;;  %s5098_s29 = sadd.s32 1, %s4955_s27  }
  0x10   : > { %6059 = sst [smem:[#allocation8_spill]] %s5098_s29  ;;  %s492_s0 = sadd.s32 1, %s4951_s26 }
  0x11   : > { %s489_s4 = ssub.s32 %s4955_s27, %s5098_s29  ;;  %p502_p0 = scmp.ne.s32.totalorder %s4951_s26, %s4947_s25 }
  0x12   : > { %p490_p1 = scmp.eq.s32.totalorder %s489_s4, 0  ;;  %p503_p2 = scmp.eq.s32.totalorder %s5094_s3, 1 }
  0x13   : > { %p508_p3 = scmp.ne.s32.totalorder %s4947_s25, %s4943_s2  ;;  %p509_p4 = scmp.eq.s32.totalorder %s3876_s28, 1 }
  0x14   : > { %s5109_s30 = scalar_select %p490_p1, %s4951_s26, %s492_s0  }
  0x15   : > { %p5111_p5 = por %p503_p2, %p502_p0  ;;  %p5115_p6 = por %p509_p4, %p508_p3 }
  0x16   : > { %6060 = sst [smem:[#allocation9_spill]] %s5109_s30  ;;  %p3879_p7 = scmp.ge.s32.totalorder %s4955_s27, 1 }
  0x17   : > { %s6062_s22 = scalar_select %p5115_p6, 1, 0 }
  0x18   : > { %p598_p8 = scmp.lt.s32.totalorder %s4955_s27, 3 }
  0x19   : > { %6063 = sst [smem:[#allocation10_spill]] %s6062_s22 }
  0x1a   : > { %p599_p9 = pnand %p3879_p7, %p598_p8 }
  0x1b   : > { %s6064_s24 = sld [smem:[#allocation16_spill]] (!%p599_p9)  ;;  %v4957_v1 = vmov (!%p599_p9), 0.0   ;;  %vm4958_vm0 = vmmov (!%p599_p9), 0   ;;  %p661_p10 = scmp.lt.s32.totalorder (!%p599_p9), %s5094_s3, 1  ;;  %vm1146_vm1 = vcmask (!%p599_p9), 261120   ;;  %vm1340_vm2 = vcmask (!%p599_p9), 64512  }
  0x1c   : > { %602 = sbr.rel (%p599_p9) target bundleno = 4078 (0xfee), region = 104  ;;  %4256 = vmatprep.subr.bf16.mxu0 (!%p599_p9), %v4957_v1  ;;  %4276 = vmatprep.subr.bf16.mxu1 (!%p599_p9), %v4957_v1  ;;  %s6065_s0 = sld [smem:[#allocation11_spill]] (!%p599_p9)  ;;  %vm1394_vm3 = vcmask (!%p599_p9), 1043456  }
  0x1d   : > { %4272 = vmatprep.mubr.msk.bf16.mxu0 (!%p599_p9), %vm4958_vm0, %v4957_v1  ;;  %4292 = vmatprep.mubr.msk.bf16.mxu1 (!%p599_p9), %vm4958_vm0, %v4957_v1  ;;  %s6066_s22 = sld [smem:[#allocation12_spill]] (!%p599_p9)  ;;  %s6067_s6 = sld [smem:[#allocation17_spill]] (!%p599_p9) }
  0x1e   : > { %s6045_s29 = smov (!%p599_p9), 96   ;;  %s6068_s27 = sld [smem:[#allocation14_spill]] (!%p599_p9) }
  0x1f   : > { %s4960_s1 = smov (!%p599_p9), 64   ;;  %s6069_s7 = sld [smem:[#allocation18_spill]] (!%p599_p9) }
  0x20   : > { %s6073_s2 = sld [smem:[#allocation19_spill]] (!%p599_p9) }
  0x21   : > { %v4700_v0 = vld [vmem:[%s6064_s24] sm:$0xff] (!%p599_p9)   ;;  %v4702_v3 = vld [vmem:[%s6064_s24 + $0x8] sm:$0xff] (!%p599_p9)   ;;  %v4704_v5 = vld [vmem:[%s6064_s24 + $0x10] sm:$0xff] (!%p599_p9)  }
  0x22   : > { %v4701_v2 = vld [vmem:[%s6064_s24 + $0x40] sm:$0xff] (!%p599_p9)   ;;  %4257 = vmatpush3.bf16.msra.mxu0 (!%p599_p9), %v4700_v0  ;;  %v4703_v4 = vld [vmem:[%s6064_s24 + $0x48] sm:$0xff] (!%p599_p9)   ;;  %v4705_v6 = vld [vmem:[%s6064_s24 + $0x50] sm:$0xff] (!%p599_p9)  }
  0x23   : > { %4277 = vmatpush3.bf16.msra.mxu1 %v4701_v2  ;;  %4258 = vmatprep.subr.bf16.mxu0 %v4957_v1  ;;  %v4706_v7 = vld [vmem:[%s6064_s24 + $0x18] sm:$0xff]   ;;  %s5158_s26 = scalar_select %p661_p10, %s5094_s3, 1  ;;  %v4708_v9 = vld [vmem:[%s6064_s24 + $0x20] sm:$0xff]   ;;  %v4710_v11 = vld [vmem:[%s6064_s24 + $0x28] sm:$0xff]  }
  0x24   : > { %4278 = vmatprep.subr.bf16.mxu1 %v4957_v1  ;;  %v4707_v8 = vld [vmem:[%s6064_s24 + $0x58] sm:$0xff]   ;;  %v4709_v10 = vld [vmem:[%s6064_s24 + $0x60] sm:$0xff]   ;;  %v4711_v12 = vld [vmem:[%s6064_s24 + $0x68] sm:$0xff]  }
  0x25   : > { %s3881_s30 = sshll.u32 %s5158_s26, 3  ;;  %v4712_v13 = vld [vmem:[%s6064_s24 + $0x30] sm:$0xff]   ;;  %v674_v15 = vld [vmem:[%s6066_s22] sm:$0xff]  ;;  %v4714_v18 = vld [vmem:[%s6064_s24 + $0x38] sm:$0xff]   ;;  %s658_s22 = sand.u32 1, %s4947_s25  }
  0x26   : > { %4259 = vmatpush3.bf16.msra.mxu0 %v4702_v3  ;;  %s5178_s4 = scalar_lea.vmem %s6065_s0, %s3881_s30  ;;  %v4713_v16 = vld [vmem:[%s6064_s24 + $0x70] sm:$0xff]   ;;  %v4715_v19 = vld [vmem:[%s6064_s24 + $0x78] sm:$0xff]   ;;  %v4716_v21 = vld [vmem:[%s6064_s24 + $0x80] sm:$0xff]   ;;  %s4067_s26 = sshll.u32 %s5094_s3, 7 }
  0x27   : > { %4279 = vmatpush3.bf16.msra.mxu1 %v4703_v4  ;;  %4260 = vmatprep.subr.bf16.mxu0 %v4957_v1  ;;  %v670_v14 = vld [vmem:[%s5178_s4] sm:$0xff]  ;;  %v4718_v23 = vld [vmem:[%s6064_s24 + $0x88] sm:$0xff]   ;;  %v4720_v25 = vld [vmem:[%s6064_s24 + $0x90] sm:$0xff]   ;;  %s4962_s3 = smov [#allocation2]  }
  0x28   : > { %4280 = vmatprep.subr.bf16.mxu1 %v4957_v1  ;;  %v675_v17 = vadd.f32 %v674_v15, %v670_v14  ;;  %v4717_v22 = vld [vmem:[%s6064_s24 + $0xc0] sm:$0xff]   ;;  %v4719_v24 = vld [vmem:[%s6064_s24 + $0xc8] sm:$0xff]   ;;  %v4721_v26 = vld [vmem:[%s6064_s24 + $0xd0] sm:$0xff]  }
  0x29   : > { %v4722_v27 = vld [vmem:[%s6064_s24 + $0x98] sm:$0xff]   ;;  %v4724_v29 = vld [vmem:[%s6064_s24 + $0xa0] sm:$0xff]   ;;  %v4726_v31 = vld [vmem:[%s6064_s24 + $0xa8] sm:$0xff]  }
  0x2a   : > { %4261 = vmatpush3.bf16.msra.mxu0 %v4704_v5  ;;  %v676_v20 = vpack.c.bf16 %v675_v17, %v675_v17  ;;  %v4723_v28 = vld [vmem:[%s6064_s24 + $0xd8] sm:$0xff]   ;;  %v4725_v30 = vld [vmem:[%s6064_s24 + $0xe0] sm:$0xff]   ;;  %v4727_v32 = vld [vmem:[%s6064_s24 + $0xe8] sm:$0xff]  }
  0x2b   : > { %4281 = vmatpush3.bf16.msra.mxu1 %v4705_v6  ;;  %4262 = vmatprep.subr.bf16.mxu0 %v4957_v1  ;;  %v4728_v33 = vld [vmem:[%s6064_s24 + $0xb0] sm:$0xff]   ;;  %v4730_v35 = vld [vmem:[%s6064_s24 + $0xb8] sm:$0xff]   ;;  %v3883_v37 = vld [vmem:[%s6067_s6] ss:$0 sm:$0xff] }
  0x2c   : > { %4282 = vmatprep.subr.bf16.mxu1 %v4957_v1  ;;  %v4729_v34 = vld [vmem:[%s6064_s24 + $0xf0] sm:$0xff]   ;;  %v4731_v36 = vld [vmem:[%s6064_s24 + $0xf8] sm:$0xff]   ;;  %v3884_v38 = vld [vmem:[%s6067_s6 + $0x1] ss:$0 sm:$0xff] }
  0x2d   : > { %v3885_v51 = vld [vmem:[%s6067_s6 + $0x2] ss:$0 sm:$0xff]  ;;  %v3886_v52 = vld [vmem:[%s6067_s6 + $0x3] ss:$0 sm:$0xff]  ;;  %s6074_s6 = smov %s6073_s2 }
  0x2e   : > { %4263 = vmatpush3.bf16.msra.mxu0 %v4706_v7 }
  0x2f   : > { %4283 = vmatpush3.bf16.msra.mxu1 %v4707_v8  ;;  %4264 = vmatprep.subr.bf16.mxu0 %v4957_v1 }
  0x30   : > { %4284 = vmatprep.subr.bf16.mxu1 %v4957_v1 }
  0x32   : > { %4265 = vmatpush3.bf16.msra.mxu0 %v4708_v9 }
  0x33   : > { %4285 = vmatpush3.bf16.msra.mxu1 %v4709_v10  ;;  %4266 = vmatprep.subr.bf16.mxu0 %v4957_v1  ;;  %v1121_v10 = vld [vmem:[%s6068_s27] sm:$0xff]  ;;  %s6071_s27 = sld [smem:[#allocation15_spill]] }
  0x34   : > { %4286 = vmatprep.subr.bf16.mxu1 %v4957_v1 }
  0x36   : > { %4267 = vmatpush3.bf16.msra.mxu0 %v4710_v11 }
  0x37   : > { %4287 = vmatpush3.bf16.msra.mxu1 %v4711_v12  ;;  %4268 = vmatprep.subr.bf16.mxu0 %v4957_v1 }
  0x38   : > { %4288 = vmatprep.subr.bf16.mxu1 %v4957_v1 }
  0x3a   : > { %4269 = vmatpush3.bf16.msra.mxu0 %v4712_v13 }
  0x3b   : > { %4289 = vmatpush3.bf16.msra.mxu1 %v4713_v16  ;;  %4270 = vmatprep.subr.bf16.mxu0 %v4957_v1 }
  0x3c   : > { %4290 = vmatprep.subr.bf16.mxu1 %v4957_v1 }
  0x3e   : > { %4271 = vmatpush3.bf16.msra.mxu0 %v4714_v18 }
  0x3f   : > { %4291 = vmatpush3.bf16.msra.mxu1 %v4715_v19  ;;  %4296 = vmatprep.subr.bf16.mxu0 %v4957_v1 }
  0x40   : > { %4316 = vmatprep.subr.bf16.mxu1 %v4957_v1 }
  0x41   : > { %4273 = vmatmul.mubr.bf16.vlgmr.msra.gmra.mrb[0].mxu0 %v676_v20 }
  0x42   : > { %4297 = vmatpush3.bf16.msra.mxu0 %v4716_v21  ;;  %4293 = vmatmul.mubr.bf16.vlgmr.msra.gmra.mrb[0].mxu1 %v676_v20 }
  0x43   : > { %4317 = vmatpush3.bf16.msra.mxu1 %v4717_v22  ;;  %4298 = vmatprep.subr.bf16.mxu0 %v4957_v1 }
  0x44   : > { %4318 = vmatprep.subr.bf16.mxu1 %v4957_v1  ;;  %4312 = vmatprep.mubr.msk.bf16.mxu0 %vm4958_vm0, %v4957_v1 }
  0x45   : > { %4332 = vmatprep.mubr.msk.bf16.mxu1 %vm4958_vm0, %v4957_v1 }
  0x46   : > { %4299 = vmatpush3.bf16.msra.mxu0 %v4718_v23 }
  0x47   : > { %4319 = vmatpush3.bf16.msra.mxu1 %v4719_v24  ;;  %4300 = vmatprep.subr.bf16.mxu0 %v4957_v1 }
  0x48   : > { %4320 = vmatprep.subr.bf16.mxu1 %v4957_v1 }
  0x4a   : > { %4301 = vmatpush3.bf16.msra.mxu0 %v4720_v25 }
  0x4b   : > { %4321 = vmatpush3.bf16.msra.mxu1 %v4721_v26  ;;  %4302 = vmatprep.subr.bf16.mxu0 %v4957_v1 }
  0x4c   : > { %4322 = vmatprep.subr.bf16.mxu1 %v4957_v1 }
  0x4e   : > { %4303 = vmatpush3.bf16.msra.mxu0 %v4722_v27 }
  0x4f   : > { %4323 = vmatpush3.bf16.msra.mxu1 %v4723_v28  ;;  %4304 = vmatprep.subr.bf16.mxu0 %v4957_v1 }
  0x50   : > { %4324 = vmatprep.subr.bf16.mxu1 %v4957_v1 }
  0x52   : > { %4305 = vmatpush3.bf16.msra.mxu0 %v4724_v29 }
  0x53   : > { %4325 = vmatpush3.bf16.msra.mxu1 %v4725_v30  ;;  %4306 = vmatprep.subr.bf16.mxu0 %v4957_v1 }
  0x54   : > { %4326 = vmatprep.subr.bf16.mxu1 %v4957_v1 }
  0x56   : > { %4307 = vmatpush3.bf16.msra.mxu0 %v4726_v31 }
  0x57   : > { %4327 = vmatpush3.bf16.msra.mxu1 %v4727_v32  ;;  %4308 = vmatprep.subr.bf16.mxu0 %v4957_v1 }
  0x58   : > { %4328 = vmatprep.subr.bf16.mxu1 %v4957_v1 }
  0x5a   : > { %4309 = vmatpush3.bf16.msra.mxu0 %v4728_v33 }
  0x5b   : > { %4329 = vmatpush3.bf16.msra.mxu1 %v4729_v34  ;;  %4310 = vmatprep.subr.bf16.mxu0 %v4957_v1 }
  0x5c   : > { %4330 = vmatprep.subr.bf16.mxu1 %v4957_v1 }
  0x5e   : > { %4311 = vmatpush3.bf16.msra.mxu0 %v4730_v35 }
  0x5f   : > { %4331 = vmatpush3.bf16.msra.mxu1 %v4731_v36  ;;  %4336 = vmatprep.subr.bf16.mxu0 %v4957_v1 }
  0x60   : > { %4342 = vmatprep.subr.bf16.mxu1 %v4957_v1 }
  0x61   : > { %4313 = vmatmul.mubr.bf16.vlgmr.msra.gmra.mrb[4].mxu0 %v676_v20 }
  0x62   : > { %4333 = vmatmul.mubr.bf16.vlgmr.msra.gmra.mrb[4].mxu1 %v676_v20  ;;  %4338 = vmatprep.mubr.msk.bf16.mxu0 %vm4958_vm0, %v4957_v1 }
  0x63   : > { %4344 = vmatprep.mubr.msk.bf16.mxu1 %vm4958_vm0, %v4957_v1 }
 0x114   : > { %v851_v39 = vpop.f32.mrb[0].mxu0 }
 0x115   : > { %v852_v40 = vadd.f32 %v3883_v37, %v851_v39  ;;  %v4274_v41 = vpop.f32.mrb[1].mxu0  ;;  %v939_v42 = vpop.f32.mrb[0].mxu1 }
 0x116   : > { %v854_v43 = vpop.f32.mrb[2].mxu0  ;;  %v940_v44 = vadd.f32 %v3884_v38, %v939_v42  ;;  %v4294_v45 = vpop.f32.mrb[1].mxu1 }
 0x117   : > { %v5285_v46 = vpack.c.bf16 %v852_v40, %v852_v40  ;;  %v4275_v47 = vpop.f32.mrb[3].mxu0  ;;  %v942_v48 = vpop.f32.mrb[2].mxu1 }
 0x118   : > { %v4295_v49 = vpop.f32.mrb[3].mxu1  ;;  %v5287_v50 = vpack.c.bf16 %v940_v44, %v940_v44 }
 0x119   : > { %1144 = vrot.lane.b32.xlu0 %v5285_v46, %s6045_s29 }
 0x11d   : > { %1194 = vrot.lane.b32.xlu0 %v5287_v50, %s6045_s29 }
 0x134   : > { %v1027_v53 = vpop.f32.mrb[4].mxu0 }
 0x135   : > { %v1028_v54 = vadd.f32 %v3885_v51, %v1027_v53  ;;  %v4314_v55 = vpop.f32.mrb[5].mxu0  ;;  %v1115_v56 = vpop.f32.mrb[4].mxu1 }
 0x136   : > { %v1116_v57 = vadd.f32 %v3886_v52, %v1115_v56  ;;  %v1030_v58 = vpop.f32.mrb[6].mxu0  ;;  %v4334_v59 = vpop.f32.mrb[5].mxu1 }
 0x137   : > { %v5299_v60 = vpack.c.bf16 %v1028_v54, %v1028_v54  ;;  %v4315_v61 = vpop.f32.mrb[7].mxu0  ;;  %v1118_v62 = vpop.f32.mrb[6].mxu1 }
 0x138   : > { %v4335_v63 = vpop.f32.mrb[7].mxu1  ;;  %v5301_v0 = vpack.c.bf16 %v1116_v57, %v1116_v57 }
 0x139   : > { %1243 = vrot.lane.b32.xlu1 %v5299_v60, %s6045_s29 }
 0x13d   : > { %1292 = vrot.lane.b32.xlu1 %v5301_v0, %s6045_s29 }
 0x18b   : > { %v1145_v2 = vpop.permute.xlu0 %1144 }
 0x18c   : > { %v1151_v3 = vsel %vm1146_vm1, %v1145_v2, 0 }
 0x18d   : > { %4337 = vmatpush3.bf16.xpose.msra.mxu0 %v1151_v3 }
 0x18e   : > { %4348 = vmatprep.subr.bf16.mxu0 %v4957_v1 }
 0x18f   : > { %v1195_v4 = vpop.permute.xlu0 %1194 }
 0x190   : > { %v1200_v5 = vsel %vm1146_vm1, %v1195_v4, 0 }
 0x191   : > { %4343 = vmatpush3.bf16.xpose.msra.mxu1 %v1200_v5 }
 0x192   : > { %4354 = vmatprep.subr.bf16.mxu1 %v4957_v1 }
 0x194   : > { %4339 = vmatmul.mubr.msk.bf16.vlgmr.msra.gmra.mrb[8].mxu0 %vm1146_vm1, %v5285_v46 }
 0x195   : > { %4350 = vmatprep.mubr.msk.bf16.mxu0 %vm4958_vm0, %v4957_v1 }
 0x198   : > { %4345 = vmatmul.mubr.msk.bf16.vlgmr.msra.gmra.mrb[8].mxu1 %vm1146_vm1, %v5287_v50 }
 0x199   : > { %4356 = vmatprep.mubr.msk.bf16.mxu1 %vm4958_vm0, %v4957_v1 }
 0x1ab   : > { %v1244_v6 = vpop.permute.xlu1 %1243 }
 0x1ac   : > { %v1249_v7 = vsel %vm1146_vm1, %v1244_v6, 0 }
 0x1ad   : > { %4349 = vmatpush3.bf16.xpose.msra.mxu0 %v1249_v7 }
 0x1ae   : > { %4360 = vmatprep.subr.bf16.mxu0 %v4957_v1 }
 0x1af   : > { %v1293_v8 = vpop.permute.xlu1 %1292 }
 0x1b0   : > { %v1298_v9 = vsel %vm1146_vm1, %v1293_v8, 0 }
 0x1b1   : > { %4355 = vmatpush3.bf16.xpose.msra.mxu1 %v1298_v9 }
 0x1b2   : > { %4366 = vmatprep.subr.bf16.mxu1 %v4957_v1 }
 0x1b4   : > { %4351 = vmatmul.mubr.msk.bf16.vlgmr.msra.gmra.mrb[12].mxu0 %vm1146_vm1, %v5299_v60 }
 0x1b5   : > { %4362 = vmatprep.mubr.msk.bf16.mxu0 %vm4958_vm0, %v4957_v1 }
 0x1b8   : > { %4357 = vmatmul.mubr.msk.bf16.vlgmr.msra.gmra.mrb[12].mxu1 %vm1146_vm1, %v5301_v0 }
 0x1b9   : > { %4368 = vmatprep.mubr.msk.bf16.mxu1 %vm4958_vm0, %v4957_v1 }
 0x267   : > { %v1187_v11 = vpop.f32.mrb[8].mxu0 }
 0x268   : > { %v1188_v12 = vadd.f32 %v1187_v11, %v1121_v10  ;;  %v4340_v13 = vpop.f32.mrb[9].mxu0 }
 0x269   : > { %v1190_v14 = vpop.f32.mrb[10].mxu0 }
 0x26a   : > { %v4341_v15 = vpop.f32.mrb[11].mxu0  ;;  %v1341_v16 = vsel %vm1340_vm2, %v1188_v12, -inf }
 0x26b   : > { %v1236_v17 = vpop.f32.mrb[8].mxu1  ;;  %1342 = vmax.xlane.f32.xlu0 %v1341_v16 }
 0x26c   : > { %v1237_v18 = vadd.f32 %v1236_v17, %v1121_v10  ;;  %v4346_v19 = vpop.f32.mrb[9].mxu1  ;;  %v4733_v17 = vld [vmem:[%s6069_s7 + $0x8] sm:$0xff]  }
 0x26d   : > { %v1239_v20 = vpop.f32.mrb[10].mxu1  ;;  %v4736_v19 = vld [vmem:[%s6069_s7 + $0x18] sm:$0xff]  }
 0x26e   : > { %v4347_v21 = vpop.f32.mrb[11].mxu1  ;;  %v1344_v22 = vsel %vm1340_vm2, %v1237_v18, -inf }
 0x26f   : > { %1345 = vmax.xlane.f32.xlu1 %v1344_v22  ;;  %v4735_v21 = vld [vmem:[%s6069_s7 + $0x20] sm:$0xff]  }
 0x280   : > { %1389 = vrot.lane.b32.xlu1 %v5285_v46, %s4960_s1 }
 0x287   : > { %v1285_v23 = vpop.f32.mrb[12].mxu0 }
 0x288   : > { %v1286_v24 = vadd.f32 %v1285_v23, %v1121_v10  ;;  %v4352_v25 = vpop.f32.mrb[13].mxu0 }
 0x289   : > { %v1288_v26 = vpop.f32.mrb[14].mxu0 }
 0x28a   : > { %v4353_v27 = vpop.f32.mrb[15].mxu0  ;;  %v1347_v28 = vsel %vm1340_vm2, %v1286_v24, -inf  ;;  %v4737_v26 = vld [vmem:[%s6069_s7 + $0x28] sm:$0xff]  }
 0x28b   : > { %v1334_v29 = vpop.f32.mrb[12].mxu1  ;;  %1348 = vmax.xlane.f32.xlu0 %v1347_v28  ;;  %v4738_v28 = vld [vmem:[%s6069_s7 + $0x30] sm:$0xff]  }
 0x28c   : > { %v1335_v30 = vadd.f32 %v1334_v29, %v1121_v10  ;;  %v4358_v31 = vpop.f32.mrb[13].mxu1 }
 0x28d   : > { %v1337_v32 = vpop.f32.mrb[14].mxu1 }
 0x28e   : > { %v4359_v33 = vpop.f32.mrb[15].mxu1  ;;  %v1350_v34 = vsel %vm1340_vm2, %v1335_v30, -inf }
 0x28f   : > { %1351 = vmax.xlane.f32.xlu0 %v1350_v34 }
 0x2f8   : > { %v1343_v35 = vpop.xlane.xlu0 %1342 }
 0x2f9   : > { %v1353_v36 = vsub.f32 %v1188_v12, %v1343_v35  ;;  %v4732_v12 = vld [vmem:[%s6069_s7] sm:$0xff]  }
 0x2fb   : > { %v1357_v37 = vmul.f32 1.442695, %v1353_v36  ;;  %v4739_v36 = vld [vmem:[%s6069_s7 + $0x38] sm:$0xff]  }
 0x2fc   : > { %v1346_v38 = vpop.xlane.xlu1 %1345 }
 0x2fd   : > { %4852 = vpow2.f32 %v1357_v37  ;;  %v1354_v39 = vsub.f32 %v1237_v18, %v1346_v38  ;;  %v4734_v18 = vld [vmem:[%s6069_s7 + $0x10] sm:$0xff]   ;;  %s5973_s7 = scalar_lea.hbm %s6073_s2, %s4067_s26 }
 0x2ff   : > { %v1359_v40 = vmul.f32 1.442695, %v1354_v39 }
 0x300   : > { %v1390_v41 = vpop.permute.xlu1 %1389 }
 0x301   : > { %4854 = vpow2.f32 %v1359_v40  ;;  %v1396_v42 = vsel %vm1394_vm3, %v1390_v41, 0 }
 0x302   : > { %4361 = vmatpush3.bf16.msra.mxu0 %v1396_v42 }
 0x303   : > { %4372 = vmatprep.subr.bf16.mxu0 %v4957_v1 }
 0x307   : > { %v4853_v43 = vpop.eup %4852 }
 0x308   : > { %v1365_v44 = vsel %vm1340_vm2, %v4853_v43, 0.0 }
 0x309   : > { %1366 = vadd.xlane.f32.xlu1 %v1365_v44 }
 0x30b   : > { %v4855_v45 = vpop.eup %4854 }
 0x30c   : > { %v1368_v46 = vsel %vm1340_vm2, %v4855_v45, 0.0 }
 0x30d   : > { %1369 = vadd.xlane.f32.xlu0 %v1368_v46 }
 0x318   : > { %v1349_v47 = vpop.xlane.xlu0 %1348 }
 0x319   : > { %v1355_v48 = vsub.f32 %v1286_v24, %v1349_v47 }
 0x31b   : > { %v1361_v49 = vmul.f32 1.442695, %v1355_v48 }
 0x31c   : > { %v1352_v51 = vpop.xlane.xlu0 %1351 }
 0x31d   : > { %4856 = vpow2.f32 %v1361_v49  ;;  %v1356_v52 = vsub.f32 %v1335_v30, %v1352_v51 }
 0x31f   : > { %v1363_v53 = vmul.f32 1.442695, %v1356_v52 }
 0x321   : > { %4858 = vpow2.f32 %v1363_v53 }
 0x327   : > { %v4857_v54 = vpop.eup %4856 }
 0x328   : > { %v1371_v55 = vsel %vm1340_vm2, %v4857_v54, 0.0 }
 0x329   : > { %1372 = vadd.xlane.f32.xlu1 %v1371_v55 }
 0x32b   : > { %v4859_v56 = vpop.eup %4858 }
 0x32c   : > { %v1374_v57 = vsel %vm1340_vm2, %v4859_v56, 0.0 }
 0x32d   : > { %1375 = vadd.xlane.f32.xlu0 %v1374_v57 }
 0x33a   : > { %1486 = vrot.lane.b32.xlu1 %v5299_v60, %s4960_s1 }
 0x33e   : > { %1534 = vrot.lane.b32.xlu1 %v5301_v0, %s4960_s1 }
 0x343   : > { %1438 = vrot.lane.b32.xlu0 %v5287_v50, %s4960_s1  ;;  %s6072_s1 = smov 96  }
 0x396   : > { %v1367_v58 = vpop.xlane.xlu1 %1366 }
 0x397   : > { %4860 = vrcp.f32 %v1367_v58 }
 0x39a   : > { %v1370_v63 = vpop.xlane.xlu0 %1369 }
 0x39b   : > { %4862 = vrcp.f32 %v1370_v63 }
 0x3a1   : > { %v4861_v59 = vpop.eup %4860 }
 0x3a2   : > { %v1381_v61 = vmul.f32 %v4861_v59, %v4853_v43  ;;  %v3939_v59 = vld [vmem:[%s6023_s8] ss:$0 sm:$0xff] }
 0x3a4   : > { %v1385_v62 = vpack.c.bf16 %v1381_v61, %v1381_v61 }
 0x3a5   : > { %v4863_v60 = vpop.eup %4862 }
 0x3a6   : > { %4363 = vmatmul.mubr.msk.bf16.vlgmr.msra.gmra.mrb[16].mxu0 %vm1340_vm2, %v1385_v62  ;;  %v1382_v50 = vmul.f32 %v4863_v60, %v4855_v45 }
 0x3a7   : > { %4374 = vmatprep.mubr.msk.bf16.mxu0 %vm4958_vm0, %v4957_v1 }
 0x3a8   : > { %v1386_v9 = vpack.c.bf16 %v1382_v50, %v1382_v50  ;;  %v4740_v50 = vld [vmem:[%s6024_s9] sm:$0xff]  }
 0x3b6   : > { %v1373_v2 = vpop.xlane.xlu1 %1372 }
 0x3b7   : > { %4864 = vrcp.f32 %v1373_v2 }
 0x3ba   : > { %v1487_v3 = vpop.permute.xlu1 %1486  ;;  %v1376_v0 = vpop.xlane.xlu0 %1375 }
 0x3bb   : > { %v1492_v4 = vsel %vm1394_vm3, %v1487_v3, 0  ;;  %4866 = vrcp.f32 %v1376_v0  ;;  %v4890_v0 = vld [vmem:[%s5178_s4] sm:$0xff]  ;;  %s6070_s4 = sld [smem:[#allocation13_spill]] }
 0x3bc   : > { %4373 = vmatpush3.bf16.msra.mxu0 %v1492_v4 }
 0x3bd   : > { %4384 = vmatprep.subr.bf16.mxu0 %v4957_v1 }
 0x3be   : > { %v1439_v5 = vpop.permute.xlu0 %1438  ;;  %v1535_v7 = vpop.permute.xlu1 %1534 }
 0x3bf   : > { %v1444_v6 = vsel %vm1394_vm3, %v1439_v5, 0  ;;  %v1540_v11 = vsel %vm1394_vm3, %v1535_v7, 0  ;;  %v4741_v5 = vld [vmem:[%s6024_s9 + $0x40] sm:$0xff]   ;;  %v4743_v7 = vld [vmem:[%s6024_s9 + $0x48] sm:$0xff]  }
 0x3c0   : > { %4367 = vmatpush3.bf16.msra.mxu1 %v1444_v6  ;;  %v4742_v6 = vld [vmem:[%s6024_s9 + $0x8] sm:$0xff]  }
 0x3c1   : > { %v4865_v8 = vpop.eup %4864  ;;  %4378 = vmatprep.subr.bf16.mxu1 %v4957_v1  ;;  %s668_s28 = scalar_lea.vmem %s6070_s4, %s3881_s30  ;;  %s3880_s4 = sshll.u32 %s658_s22, 3 }
 0x3c2   : > { %v1383_v10 = vmul.f32 %v4865_v8, %v4857_v54  ;;  %v4744_v8 = vld [vmem:[%s6024_s9 + $0x10] sm:$0xff]   ;;  %s660_s30 = scalar_lea.vmem [#allocation2], %s3880_s4  ;;  %s4897_s4 = sshll.u32 %s4962_s3, 4  ;;  %s4898_s4 = int_to_ptr.vmem [resolvable:$false] %s4897_s4 }
 0x3c3   : > { %4369 = vmatmul.mubr.msk.bf16.vlgmr.msra.gmra.mrb[16].mxu1 %vm1340_vm2, %v1386_v9  ;;  %v4745_v9 = vld [vmem:[%s6024_s9 + $0x50] sm:$0xff]   ;;  %s4899_s23 = scalar_lea.vmem %s4898_s4, 256 }
 0x3c4   : > { %4379 = vmatpush3.bf16.msra.mxu1 %v1540_v11  ;;  %v1387_v13 = vpack.c.bf16 %v1383_v10, %v1383_v10  ;;  %4380 = vmatprep.mubr.msk.bf16.mxu1 %vm4958_vm0, %v4957_v1 }
 0x3c5   : > { %v4867_v14 = vpop.eup %4866  ;;  %4392 = vmatprep.subr.bf16.mxu1 %v4957_v1 }
 0x3c6   : > { %v1384_v15 = vmul.f32 %v4867_v14, %v4859_v56  ;;  %4375 = vmatmul.mubr.msk.bf16.vlgmr.msra.gmra.mrb[20].mxu0 %vm1340_vm2, %v1387_v13  ;;  %v4746_v14 = vld [vmem:[%s6024_s9 + $0x18] sm:$0xff]  }
 0x3c7   : > { %4385 = vmatpush3.bf16.msra.mxu0 %v4732_v12  ;;  %4388 = vmatprep.mubr.msk.bf16.mxu0 %vm4958_vm0, %v4957_v1 }
 0x3c8   : > { %v1388_v16 = vpack.c.bf16 %v1384_v15, %v1384_v15  ;;  %4386 = vmatprep.subr.bf16.mxu0 %v4957_v1  ;;  %v4747_v15 = vld [vmem:[%s6024_s9 + $0x58] sm:$0xff]  }
 0x3cb   : > { %4381 = vmatmul.mubr.msk.bf16.vlgmr.msra.gmra.mrb[20].mxu1 %vm1340_vm2, %v1388_v16  ;;  %4387 = vmatpush3.bf16.msra.mxu0 %v4733_v17  ;;  %v4748_v16 = vld [vmem:[%s6024_s9 + $0x20] sm:$0xff]  }
 0x3cc   : > { %4396 = vmatprep.mubr.msk.bf16.mxu1 %vm4958_vm0, %v4957_v1  ;;  %4400 = vmatprep.subr.bf16.mxu0 %v4957_v1  ;;  %v4749_v17 = vld [vmem:[%s6024_s9 + $0x60] sm:$0xff]  }
 0x3cd   : > { %4393 = vmatpush3.bf16.msra.mxu1 %v4734_v18  ;;  %v4750_v18 = vld [vmem:[%s6024_s9 + $0x28] sm:$0xff]  }
 0x3ce   : > { %4394 = vmatprep.subr.bf16.mxu1 %v4957_v1 }
 0x3d1   : > { %4395 = vmatpush3.bf16.msra.mxu1 %v4736_v19  ;;  %v4751_v19 = vld [vmem:[%s6024_s9 + $0x68] sm:$0xff]  }
 0x3d2   : > { %4408 = vmatprep.subr.bf16.mxu1 %v4957_v1 }
 0x479   : > { %v1432_v20 = vpop.f32.mrb[16].mxu0 }
 0x47a   : > { %v1582_v22 = vpack.c.bf16 %v1432_v20, %v1432_v20  ;;  %v4364_v23 = vpop.f32.mrb[17].mxu0  ;;  %v4752_v20 = vld [vmem:[%s6024_s9 + $0x30] sm:$0xff]  }
 0x47b   : > { %v1435_v24 = vpop.f32.mrb[18].mxu0  ;;  %v4755_v23 = vld [vmem:[%s6024_s9 + $0x78] sm:$0xff]  }
 0x47c   : > { %v4365_v25 = vpop.f32.mrb[19].mxu0  ;;  %4389 = vmatmul.mubr.msk.bf16.vlgmr.msra.gmra.mrb[24].mxu0 %vm1146_vm1, %v1582_v22  ;;  %v4754_v22 = vld [vmem:[%s6024_s9 + $0x38] sm:$0xff]  }
 0x47d   : > { %4401 = vmatpush3.bf16.msra.mxu0 %v4735_v21  ;;  %4404 = vmatprep.mubr.msk.bf16.mxu0 %vm4958_vm0, %v4957_v1  ;;  %v4753_v21 = vld [vmem:[%s6024_s9 + $0x70] sm:$0xff]  }
 0x47e   : > { %4402 = vmatprep.subr.bf16.mxu0 %v4957_v1 }
 0x481   : > { %4403 = vmatpush3.bf16.msra.mxu0 %v4737_v26  ;;  %v1829_v26 = vlaneseq }
 0x482   : > { %4416 = vmatprep.subr.bf16.mxu0 %v4957_v1 }
 0x496   : > { %v1480_v27 = vpop.f32.mrb[16].mxu1 }
 0x497   : > { %v1583_v29 = vpack.c.bf16 %v1480_v27, %v1480_v27  ;;  %v4370_v30 = vpop.f32.mrb[17].mxu1 }
 0x498   : > { %v1483_v31 = vpop.f32.mrb[18].mxu1  ;;  %v5490_v30 = vld [vmem:[%s6030_s15] sm:$0x7] }
 0x499   : > { %v4371_v32 = vpop.f32.mrb[19].mxu1  ;;  %v1528_v33 = vpop.f32.mrb[20].mxu0  ;;  %4397 = vmatmul.mubr.msk.bf16.vlgmr.msra.gmra.mrb[24].mxu1 %vm1146_vm1, %v1583_v29  ;;  %v5495_v31 = vld [vmem:[%s6031_s16] sm:$0x7] }
 0x49a   : > { %v1584_v34 = vpack.c.bf16 %v1528_v33, %v1528_v33  ;;  %v4376_v35 = vpop.f32.mrb[21].mxu0  ;;  %4409 = vmatpush3.bf16.msra.mxu1 %v4738_v28  ;;  %4412 = vmatprep.mubr.msk.bf16.mxu1 %vm4958_vm0, %v4957_v1  ;;  %v5482_v28 = vshrl.u32 %v1829_v26, 7 }
 0x49b   : > { %v1531_v37 = vpop.f32.mrb[22].mxu0  ;;  %4410 = vmatprep.subr.bf16.mxu1 %v4957_v1 }
 0x49c   : > { %v4377_v38 = vpop.f32.mrb[23].mxu0  ;;  %4405 = vmatmul.mubr.msk.bf16.vlgmr.msra.gmra.mrb[28].mxu0 %vm1146_vm1, %v1584_v34  ;;  %v5485_v29 = vsub.s32 0, %v5482_v28 }
 0x49d   : > { %4432 = vmatprep.mubr.msk.bf16.mxu0 %vm4958_vm0, %v4957_v1  ;;  %4417 = vmatpush3.bf16.msra.mxu0 %v4740_v50  ;;  %v4756_v38 = vld [vmem:[%s6024_s9 + $0x80] sm:$0xff]   ;;  %v4784_v50 = vld [vmem:[%s6026_s11 + $0x30] sm:$0xff]  }
 0x49e   : > { %v1576_v39 = vpop.f32.mrb[20].mxu1  ;;  %4411 = vmatpush3.bf16.msra.mxu1 %v4739_v36  ;;  %4418 = vmatprep.subr.bf16.mxu0 %v4957_v1  ;;  %v1832_v32 = vrot.slane %v5490_v30, %v5485_v29  ;;  %v1837_v35 = vrot.slane %v5495_v31, %v5485_v29 }
 0x49f   : > { %v1585_v40 = vpack.c.bf16 %v1576_v39, %v1576_v39  ;;  %v4382_v41 = vpop.f32.mrb[21].mxu1  ;;  %4436 = vmatprep.subr.bf16.mxu1 %v4957_v1  ;;  %v4757_v39 = vld [vmem:[%s6024_s9 + $0xc0] sm:$0xff]  }
 0x4a0   : > { %v1579_v42 = vpop.f32.mrb[22].mxu1  ;;  %v4758_v41 = vld [vmem:[%s6024_s9 + $0x88] sm:$0xff]  }
 0x4a1   : > { %v4383_v43 = vpop.f32.mrb[23].mxu1  ;;  %4413 = vmatmul.mubr.msk.bf16.vlgmr.msra.gmra.mrb[28].mxu1 %vm1146_vm1, %v1585_v40  ;;  %4419 = vmatpush3.bf16.msra.mxu0 %v4742_v6  ;;  %v4759_v42 = vld [vmem:[%s6024_s9 + $0xc8] sm:$0xff]   ;;  %v4786_v6 = vld [vmem:[%s6026_s11 + $0x38] sm:$0xff]  }
 0x4a2   : > { %4452 = vmatprep.mubr.msk.bf16.mxu1 %vm4958_vm0, %v4957_v1  ;;  %4437 = vmatpush3.bf16.msra.mxu1 %v4741_v5  ;;  %v4760_v43 = vld [vmem:[%s6024_s9 + $0x90] sm:$0xff]  }
 0x4a3   : > { %4438 = vmatprep.subr.bf16.mxu1 %v4957_v1  ;;  %4420 = vmatprep.subr.bf16.mxu0 %v4957_v1  ;;  %v4785_v5 = vld [vmem:[%s6026_s11 + $0x70] sm:$0xff]  }
 0x4a5   : > { %4421 = vmatpush3.bf16.msra.mxu0 %v4744_v8  ;;  %v671_v8 = vld [vmem:[%s668_s28] sm:$0xff]  ;;  %s3792_s28 = scalar_lea.sflag [#allocation3], %s658_s22 }
 0x4a6   : > { %4439 = vmatpush3.bf16.msra.mxu1 %v4743_v7  ;;  %4422 = vmatprep.subr.bf16.mxu0 %v4957_v1  ;;  %v4787_v7 = vld [vmem:[%s6026_s11 + $0x78] sm:$0xff]  }
 0x4a7   : > { %4440 = vmatprep.subr.bf16.mxu1 %v4957_v1 }
 0x4a9   : > { %4423 = vmatpush3.bf16.msra.mxu0 %v4746_v14  ;;  %v4792_v14 = vld [vmem:[%s6026_s11 + $0x90] sm:$0xff]  }
 0x4aa   : > { %4441 = vmatpush3.bf16.msra.mxu1 %v4745_v9  ;;  %4424 = vmatprep.subr.bf16.mxu0 %v4957_v1  ;;  %v1840_v9 = vpack.c.bf16 %v671_v8, %v671_v8 }
 0x4ab   : > { %4442 = vmatprep.subr.bf16.mxu1 %v4957_v1 }
 0x4ad   : > { %4425 = vmatpush3.bf16.msra.mxu0 %v4748_v16  ;;  %v4794_v16 = vld [vmem:[%s6026_s11 + $0x98] sm:$0xff]  }
 0x4ae   : > { %4443 = vmatpush3.bf16.msra.mxu1 %v4747_v15  ;;  %4426 = vmatprep.subr.bf16.mxu0 %v4957_v1  ;;  %v4793_v15 = vld [vmem:[%s6026_s11 + $0xd0] sm:$0xff]  }
 0x4af   : > { %4444 = vmatprep.subr.bf16.mxu1 %v4957_v1 }
 0x4b1   : > { %4427 = vmatpush3.bf16.msra.mxu0 %v4750_v18  ;;  %v4796_v18 = vld [vmem:[%s6026_s11 + $0xa0] sm:$0xff]  }
 0x4b2   : > { %4445 = vmatpush3.bf16.msra.mxu1 %v4749_v17  ;;  %4428 = vmatprep.subr.bf16.mxu0 %v4957_v1  ;;  %v4795_v17 = vld [vmem:[%s6026_s11 + $0xd8] sm:$0xff]  }
 0x4b3   : > { %4446 = vmatprep.subr.bf16.mxu1 %v4957_v1 }
 0x4b5   : > { %4429 = vmatpush3.bf16.msra.mxu0 %v4752_v20  ;;  %v4798_v20 = vld [vmem:[%s6026_s11 + $0xa8] sm:$0xff]  }
 0x4b6   : > { %4447 = vmatpush3.bf16.msra.mxu1 %v4751_v19  ;;  %4430 = vmatprep.subr.bf16.mxu0 %v4957_v1  ;;  %v4797_v19 = vld [vmem:[%s6026_s11 + $0xe0] sm:$0xff]  }
 0x4b7   : > { %4448 = vmatprep.subr.bf16.mxu1 %v4957_v1 }
 0x4b9   : > { %4431 = vmatpush3.bf16.msra.mxu0 %v4754_v22  ;;  %v4800_v22 = vld [vmem:[%s6026_s11 + $0xb0] sm:$0xff]  }
 0x4ba   : > { %4449 = vmatpush3.bf16.msra.mxu1 %v4753_v21  ;;  %4456 = vmatprep.subr.bf16.mxu0 %v4957_v1  ;;  %v4799_v21 = vld [vmem:[%s6026_s11 + $0xe8] sm:$0xff]  }
 0x4bb   : > { %4450 = vmatprep.subr.bf16.mxu1 %v4957_v1 }
 0x4be   : > { %4451 = vmatpush3.bf16.msra.mxu1 %v4755_v23  ;;  %v4801_v23 = vld [vmem:[%s6026_s11 + $0xf0] sm:$0xff]  }
 0x4bf   : > { %4476 = vmatprep.subr.bf16.mxu1 %v4957_v1 }
 0x54f   : > { %v1635_v44 = vpop.f32.mrb[24].mxu0 }
 0x550   : > { %v4390_v45 = vpop.f32.mrb[25].mxu0 }
 0x551   : > { %v1638_v46 = vpop.f32.mrb[26].mxu0  ;;  %v4762_v45 = vld [vmem:[%s6024_s9 + $0x98] sm:$0xff]  }
 0x552   : > { %v4391_v47 = vpop.f32.mrb[27].mxu0  ;;  %v4763_v46 = vld [vmem:[%s6024_s9 + $0xd8] sm:$0xff]  }
 0x553   : > { %v4764_v47 = vld [vmem:[%s6024_s9 + $0xa0] sm:$0xff]  }
 0x56c   : > { %v1690_v48 = vpop.f32.mrb[24].mxu1 }
 0x56d   : > { %v1806_v49 = vadd.f32 %v1690_v48, %v1635_v44  ;;  %v4398_v51 = vpop.f32.mrb[25].mxu1  ;;  %v4761_v44 = vld [vmem:[%s6024_s9 + $0xd0] sm:$0xff]   ;;  %v4765_v48 = vld [vmem:[%s6024_s9 + $0xe0] sm:$0xff]  }
 0x56e   : > { %v1693_v52 = vpop.f32.mrb[26].mxu1  ;;  %v4767_v51 = vld [vmem:[%s6024_s9 + $0xe8] sm:$0xff]  }
 0x56f   : > { %v4399_v53 = vpop.f32.mrb[27].mxu1  ;;  %v1745_v54 = vpop.f32.mrb[28].mxu0  ;;  %v4768_v52 = vld [vmem:[%s6024_s9 + $0xb0] sm:$0xff]  }
 0x570   : > { %v1807_v55 = vadd.f32 %v1806_v49, %v1745_v54  ;;  %v4406_v56 = vpop.f32.mrb[29].mxu0  ;;  %v4766_v49 = vld [vmem:[%s6024_s9 + $0xa8] sm:$0xff]   ;;  %v4769_v53 = vld [vmem:[%s6024_s9 + $0xf0] sm:$0xff]   ;;  %v4770_v54 = vld [vmem:[%s6024_s9 + $0xb8] sm:$0xff]  }
 0x571   : > { %v1748_v57 = vpop.f32.mrb[30].mxu0  ;;  %v4772_v56 = vld [vmem:[%s6026_s11] sm:$0xff]  }
 0x572   : > { %v4407_v58 = vpop.f32.mrb[31].mxu0  ;;  %v4773_v57 = vld [vmem:[%s6026_s11 + $0x40] sm:$0xff]  }
 0x573   : > { %v4774_v58 = vld [vmem:[%s6026_s11 + $0x8] sm:$0xff]  }
 0x574   : > { %v1800_v61 = vpop.f32.mrb[28].mxu1 }
 0x575   : > { %v1808_v62 = vadd.f32 %v1807_v55, %v1800_v61  ;;  %v4414_v63 = vpop.f32.mrb[29].mxu1  ;;  %v4771_v55 = vld [vmem:[%s6024_s9 + $0xf8] sm:$0xff]   ;;  %v4776_v61 = vld [vmem:[%s6026_s11 + $0x10] sm:$0xff]  }
 0x576   : > { %v1803_v2 = vpop.f32.mrb[30].mxu1  ;;  %v4778_v63 = vld [vmem:[%s6026_s11 + $0x18] sm:$0xff]  }
 0x577   : > { %v1815_v60 = vadd.f32 %v3939_v59, %v1808_v62  ;;  %v4415_v3 = vpop.f32.mrb[31].mxu1  ;;  %v4775_v59 = vld [vmem:[%s6026_s11 + $0x48] sm:$0xff]   ;;  %v4777_v62 = vld [vmem:[%s6026_s11 + $0x50] sm:$0xff]   ;;  %v4779_v2 = vld [vmem:[%s6026_s11 + $0x58] sm:$0xff]  }
 0x578   : > { %v4781_v3 = vld [vmem:[%s6026_s11 + $0x60] sm:$0xff]  }
 0x579   : > { %v1816_v4 = vadd.f32 %v4890_v0, %v1815_v60  ;;  %v4780_v60 = vld [vmem:[%s6026_s11 + $0x20] sm:$0xff]   ;;  %v4782_v0 = vld [vmem:[%s6026_s11 + $0x28] sm:$0xff]  }
 0x57b   : > { %1817 = vadd.xlane.f32.xlu0 %v1816_v4 }
 0x608   : > { %v1818_v10 = vpop.xlane.xlu0 %1817 }
 0x609   : > { %v1820_v11 = vmul.f32 0.0078125, %v1818_v10  ;;  %v4788_v10 = vld [vmem:[%s6026_s11 + $0x80] sm:$0xff]  }
 0x60b   : > { %v1821_v12 = vsub.f32 %v1816_v4, %v1820_v11  ;;  %v4783_v4 = vld [vmem:[%s6026_s11 + $0x68] sm:$0xff]   ;;  %v4789_v11 = vld [vmem:[%s6026_s11 + $0xc0] sm:$0xff]  }
 0x60d   : > { %v1822_v13 = vmul.f32 %v1821_v12, %v1821_v12 }
 0x60f   : > { %1823 = vadd.xlane.f32.xlu1 %v1822_v13  ;;  %v4791_v13 = vld [vmem:[%s6026_s11 + $0xc8] sm:$0xff]  }
 0x69c   : > { %v1824_v24 = vpop.xlane.xlu1 %1823 }
 0x69d   : > { %v1825_v25 = vmul.f32 0.0078125, %v1824_v24  ;;  %v4802_v24 = vld [vmem:[%s6026_s11 + $0xb8] sm:$0xff]  }
 0x69f   : > { %v1826_v27 = vadd.f32 1e-05, %v1825_v25  ;;  %v4803_v25 = vld [vmem:[%s6026_s11 + $0xf8] sm:$0xff]  }
 0x6a1   : > { %4868 = vrsqrt.f32 %v1826_v27 }
 0x6ab   : > { %v4869_v33 = vpop.eup %4868 }
 0x6ac   : > { %v1828_v34 = vmul.f32 %v4869_v33, %v1821_v12  ;;  %v4790_v12 = vld [vmem:[%s6026_s11 + $0x88] sm:$0xff]  }
 0x6ae   : > { %v1833_v36 = vmul.f32 %v1832_v32, %v1828_v34 }
 0x6b0   : > { %v5501_v37 = vadd.f32 %v1837_v35, %v1833_v36 }
 0x6b2   : > { %v1839_v40 = vpack.c.bf16 %v5501_v37, %v5501_v37 }
 0x6b4   : > { %4433 = vmatmul.mubr.bf16.vlgmr.msra.gmra.mrb[32].mxu0 %v1839_v40  ;;  %4453 = vmatmul.mubr.bf16.vlgmr.msra.gmra.mrb[32].mxu1 %v1839_v40 }
 0x6b5   : > { %4457 = vmatpush3.bf16.msra.mxu0 %v4756_v38  ;;  %4477 = vmatpush3.bf16.msra.mxu1 %v4757_v39 }
 0x6b6   : > { %4458 = vmatprep.subr.bf16.mxu0 %v4957_v1  ;;  %4478 = vmatprep.subr.bf16.mxu1 %v4957_v1 }
 0x6b7   : > { %4472 = vmatprep.mubr.msk.bf16.mxu0 %vm4958_vm0, %v4957_v1  ;;  %4492 = vmatprep.mubr.msk.bf16.mxu1 %vm4958_vm0, %v4957_v1 }
 0x6b9   : > { %4459 = vmatpush3.bf16.msra.mxu0 %v4758_v41  ;;  %4479 = vmatpush3.bf16.msra.mxu1 %v4759_v42 }
 0x6ba   : > { %4460 = vmatprep.subr.bf16.mxu0 %v4957_v1  ;;  %4480 = vmatprep.subr.bf16.mxu1 %v4957_v1 }
 0x6bd   : > { %4461 = vmatpush3.bf16.msra.mxu0 %v4760_v43  ;;  %4481 = vmatpush3.bf16.msra.mxu1 %v4761_v44 }
 0x6be   : > { %4462 = vmatprep.subr.bf16.mxu0 %v4957_v1  ;;  %4482 = vmatprep.subr.bf16.mxu1 %v4957_v1 }
 0x6c1   : > { %4463 = vmatpush3.bf16.msra.mxu0 %v4762_v45  ;;  %4483 = vmatpush3.bf16.msra.mxu1 %v4763_v46 }
 0x6c2   : > { %4464 = vmatprep.subr.bf16.mxu0 %v4957_v1  ;;  %4484 = vmatprep.subr.bf16.mxu1 %v4957_v1 }
 0x6c5   : > { %4465 = vmatpush3.bf16.msra.mxu0 %v4764_v47  ;;  %4485 = vmatpush3.bf16.msra.mxu1 %v4765_v48  ;;  %v3976_v47 = vld [vmem:[%s6027_s12] ss:$0 sm:$0xff]  ;;  %v3977_v48 = vld [vmem:[%s6027_s12 + $0x1] ss:$0 sm:$0xff] }
 0x6c6   : > { %4466 = vmatprep.subr.bf16.mxu0 %v4957_v1  ;;  %4486 = vmatprep.subr.bf16.mxu1 %v4957_v1 }
 0x6c9   : > { %4467 = vmatpush3.bf16.msra.mxu0 %v4766_v49  ;;  %4487 = vmatpush3.bf16.msra.mxu1 %v4767_v51 }
 0x6ca   : > { %4468 = vmatprep.subr.bf16.mxu0 %v4957_v1  ;;  %4488 = vmatprep.subr.bf16.mxu1 %v4957_v1 }
 0x6cd   : > { %4469 = vmatpush3.bf16.msra.mxu0 %v4768_v52  ;;  %4489 = vmatpush3.bf16.msra.mxu1 %v4769_v53 }
 0x6ce   : > { %4470 = vmatprep.subr.bf16.mxu0 %v4957_v1  ;;  %4490 = vmatprep.subr.bf16.mxu1 %v4957_v1 }
 0x6d1   : > { %4471 = vmatpush3.bf16.msra.mxu0 %v4770_v54  ;;  %4491 = vmatpush3.bf16.msra.mxu1 %v4771_v55 }
 0x6d2   : > { %4496 = vmatprep.subr.bf16.mxu0 %v4957_v1  ;;  %4516 = vmatprep.subr.bf16.mxu1 %v4957_v1 }
 0x6d4   : > { %4473 = vmatmul.mubr.bf16.vlgmr.msra.gmra.mrb[36].mxu0 %v1839_v40  ;;  %4493 = vmatmul.mubr.bf16.vlgmr.msra.gmra.mrb[36].mxu1 %v1839_v40 }
 0x6d5   : > { %4497 = vmatpush3.bf16.msra.mxu0 %v4772_v56  ;;  %4517 = vmatpush3.bf16.msra.mxu1 %v4773_v57 }
 0x6d6   : > { %4498 = vmatprep.subr.bf16.mxu0 %v4957_v1  ;;  %4518 = vmatprep.subr.bf16.mxu1 %v4957_v1 }
 0x6d7   : > { %4512 = vmatprep.mubr.msk.bf16.mxu0 %vm4958_vm0, %v4957_v1  ;;  %4532 = vmatprep.mubr.msk.bf16.mxu1 %vm4958_vm0, %v4957_v1 }
 0x6d9   : > { %4499 = vmatpush3.bf16.msra.mxu0 %v4774_v58  ;;  %4519 = vmatpush3.bf16.msra.mxu1 %v4775_v59 }
 0x6da   : > { %4500 = vmatprep.subr.bf16.mxu0 %v4957_v1  ;;  %4520 = vmatprep.subr.bf16.mxu1 %v4957_v1 }
 0x6dd   : > { %4501 = vmatpush3.bf16.msra.mxu0 %v4776_v61  ;;  %4521 = vmatpush3.bf16.msra.mxu1 %v4777_v62 }
 0x6de   : > { %4502 = vmatprep.subr.bf16.mxu0 %v4957_v1  ;;  %4522 = vmatprep.subr.bf16.mxu1 %v4957_v1 }
 0x6e1   : > { %4503 = vmatpush3.bf16.msra.mxu0 %v4778_v63  ;;  %4523 = vmatpush3.bf16.msra.mxu1 %v4779_v2  ;;  %v3940_v63 = vld [vmem:[%s6025_s10] ss:$0 sm:$0xff]  ;;  %v3941_v2 = vld [vmem:[%s6025_s10 + $0x1] ss:$0 sm:$0xff] }
 0x6e2   : > { %4504 = vmatprep.subr.bf16.mxu0 %v4957_v1  ;;  %4524 = vmatprep.subr.bf16.mxu1 %v4957_v1 }
 0x6e5   : > { %4505 = vmatpush3.bf16.msra.mxu0 %v4780_v60  ;;  %4525 = vmatpush3.bf16.msra.mxu1 %v4781_v3 }
 0x6e6   : > { %4506 = vmatprep.subr.bf16.mxu0 %v4957_v1  ;;  %4526 = vmatprep.subr.bf16.mxu1 %v4957_v1 }
 0x6e9   : > { %4507 = vmatpush3.bf16.msra.mxu0 %v4782_v0  ;;  %4527 = vmatpush3.bf16.msra.mxu1 %v4783_v4 }
 0x6ea   : > { %4508 = vmatprep.subr.bf16.mxu0 %v4957_v1  ;;  %4528 = vmatprep.subr.bf16.mxu1 %v4957_v1 }
 0x6ed   : > { %4509 = vmatpush3.bf16.msra.mxu0 %v4784_v50  ;;  %4529 = vmatpush3.bf16.msra.mxu1 %v4785_v5 }
 0x6ee   : > { %4510 = vmatprep.subr.bf16.mxu0 %v4957_v1  ;;  %4530 = vmatprep.subr.bf16.mxu1 %v4957_v1 }
 0x6f1   : > { %4511 = vmatpush3.bf16.msra.mxu0 %v4786_v6  ;;  %4531 = vmatpush3.bf16.msra.mxu1 %v4787_v7  ;;  %v3978_v6 = vld [vmem:[%s6027_s12 + $0x2] ss:$0 sm:$0xff]  ;;  %v3979_v7 = vld [vmem:[%s6027_s12 + $0x3] ss:$0 sm:$0xff] }
 0x6f2   : > { %4536 = vmatprep.subr.bf16.mxu0 %v4957_v1  ;;  %4556 = vmatprep.subr.bf16.mxu1 %v4957_v1 }
 0x6f4   : > { %4513 = vmatmul.mubr.bf16.vlgmr.msra.gmra.mrb[40].mxu0 %v1840_v9  ;;  %4533 = vmatmul.mubr.bf16.vlgmr.msra.gmra.mrb[40].mxu1 %v1840_v9 }
 0x6f5   : > { %4537 = vmatpush3.bf16.msra.mxu0 %v4788_v10  ;;  %4557 = vmatpush3.bf16.msra.mxu1 %v4789_v11 }
 0x6f6   : > { %4538 = vmatprep.subr.bf16.mxu0 %v4957_v1  ;;  %4558 = vmatprep.subr.bf16.mxu1 %v4957_v1 }
 0x6f7   : > { %4552 = vmatprep.mubr.msk.bf16.mxu0 %vm4958_vm0, %v4957_v1  ;;  %4572 = vmatprep.mubr.msk.bf16.mxu1 %vm4958_vm0, %v4957_v1 }
 0x6f9   : > { %4539 = vmatpush3.bf16.msra.mxu0 %v4790_v12  ;;  %4559 = vmatpush3.bf16.msra.mxu1 %v4791_v13 }
 0x6fa   : > { %4540 = vmatprep.subr.bf16.mxu0 %v4957_v1  ;;  %4560 = vmatprep.subr.bf16.mxu1 %v4957_v1 }
 0x6fd   : > { %4541 = vmatpush3.bf16.msra.mxu0 %v4792_v14  ;;  %4561 = vmatpush3.bf16.msra.mxu1 %v4793_v15 }
 0x6fe   : > { %4542 = vmatprep.subr.bf16.mxu0 %v4957_v1  ;;  %4562 = vmatprep.subr.bf16.mxu1 %v4957_v1 }
 0x701   : > { %4543 = vmatpush3.bf16.msra.mxu0 %v4794_v16  ;;  %4563 = vmatpush3.bf16.msra.mxu1 %v4795_v17 }
 0x702   : > { %4544 = vmatprep.subr.bf16.mxu0 %v4957_v1  ;;  %4564 = vmatprep.subr.bf16.mxu1 %v4957_v1 }
 0x705   : > { %4545 = vmatpush3.bf16.msra.mxu0 %v4796_v18  ;;  %4565 = vmatpush3.bf16.msra.mxu1 %v4797_v19 }
 0x706   : > { %4546 = vmatprep.subr.bf16.mxu0 %v4957_v1  ;;  %4566 = vmatprep.subr.bf16.mxu1 %v4957_v1 }
 0x709   : > { %4547 = vmatpush3.bf16.msra.mxu0 %v4798_v20  ;;  %4567 = vmatpush3.bf16.msra.mxu1 %v4799_v21  ;;  %v3942_v20 = vld [vmem:[%s6025_s10 + $0x2] ss:$0 sm:$0xff]  ;;  %v3943_v21 = vld [vmem:[%s6025_s10 + $0x3] ss:$0 sm:$0xff] }
 0x70a   : > { %4548 = vmatprep.subr.bf16.mxu0 %v4957_v1  ;;  %4568 = vmatprep.subr.bf16.mxu1 %v4957_v1 }
 0x70d   : > { %4549 = vmatpush3.bf16.msra.mxu0 %v4800_v22  ;;  %4569 = vmatpush3.bf16.msra.mxu1 %v4801_v23 }
 0x70e   : > { %4550 = vmatprep.subr.bf16.mxu0 %v4957_v1  ;;  %4570 = vmatprep.subr.bf16.mxu1 %v4957_v1 }
 0x711   : > { %4551 = vmatpush3.bf16.msra.mxu0 %v4802_v24  ;;  %4571 = vmatpush3.bf16.msra.mxu1 %v4803_v25 }
 0x712   : > { %4576 = vmatprep.subr.bf16.mxu0 %v4957_v1  ;;  %4582 = vmatprep.subr.bf16.mxu1 %v4957_v1 }
 0x714   : > { %4553 = vmatmul.mubr.bf16.vlgmr.msra.gmra.mrb[44].mxu0 %v1840_v9  ;;  %4573 = vmatmul.mubr.bf16.vlgmr.msra.gmra.mrb[44].mxu1 %v1840_v9 }
 0x715   : > { %4578 = vmatprep.mubr.msk.bf16.mxu0 %vm4958_vm0, %v4957_v1  ;;  %4584 = vmatprep.mubr.msk.bf16.mxu1 %vm4958_vm0, %v4957_v1 }
 0x787   : > { %v2015_v26 = vpop.f32.mrb[32].mxu0  ;;  %v2103_v27 = vpop.f32.mrb[32].mxu1 }
 0x788   : > { %v4434_v32 = vpop.f32.mrb[33].mxu0  ;;  %v4454_v33 = vpop.f32.mrb[33].mxu1  ;;  %v2016_v0 = vadd.f32 %v3940_v63, %v2015_v26  ;;  %v2104_v4 = vadd.f32 %v3941_v2, %v2103_v27 }
 0x789   : > { %v2018_v34 = vpop.f32.mrb[34].mxu0  ;;  %v2106_v35 = vpop.f32.mrb[34].mxu1  ;;  %v2729_v32 = vld [vmem:[%s6071_s27] sm:$0xff]  ;;  %s3805_s27 = sshll.u32 %s660_s30, 4  ;;  %s5975_s27 = int_to_ptr.vmem [resolvable:$true] %s3805_s27 }
 0x78a   : > { %v4435_v36 = vpop.f32.mrb[35].mxu0  ;;  %v4455_v38 = vpop.f32.mrb[35].mxu1  ;;  %v2747_v50 = vpack.c.bf16 %v2016_v0, %v2016_v0  ;;  %v2748_v5 = vpack.c.bf16 %v2104_v4, %v2104_v4  ;;  %s4893_s0 = scalar_lea.vmem %s5975_s27, 128  ;;  %p4900_p0 = scmp.lt.s32.totalorder %s5975_s27, %s4898_s4 }
 0x78b   : > { %p4894_p11 = scmp.ne.s32.totalorder %s5975_s27, %s4893_s0  ;;  %p4901_p1 = scmp.lt.s32.totalorder %s4899_s23, %s4893_s0 }
 0x78d   : > { %p4895_p12 = pnand %p4894_p11, %p5111_p5  ;;  %p4902_p2 = por %p4901_p1, %p4900_p0 }
 0x78f   : > { %p4896_p13 = pneg %p4895_p12 }
 0x791   : > { %p4903_p3 = pnand %p4902_p2, %p4896_p13 }
 0x7a7   : > { %v2191_v39 = vpop.f32.mrb[36].mxu0  ;;  %v2279_v40 = vpop.f32.mrb[36].mxu1 }
 0x7a8   : > { %v4474_v41 = vpop.f32.mrb[37].mxu0  ;;  %v4494_v42 = vpop.f32.mrb[37].mxu1  ;;  %v2192_v24 = vadd.f32 %v3942_v20, %v2191_v39  ;;  %v2280_v25 = vadd.f32 %v3943_v21, %v2279_v40 }
 0x7a9   : > { %v2194_v43 = vpop.f32.mrb[38].mxu0  ;;  %v2282_v44 = vpop.f32.mrb[38].mxu1 }
 0x7aa   : > { %v4475_v45 = vpop.f32.mrb[39].mxu0  ;;  %v4495_v46 = vpop.f32.mrb[39].mxu1  ;;  %v2749_v26 = vpack.c.bf16 %v2192_v24, %v2192_v24  ;;  %v2750_v27 = vpack.c.bf16 %v2280_v25, %v2280_v25 }
 0x7c7   : > { %v2459_v49 = vpop.f32.mrb[40].mxu0  ;;  %v2547_v51 = vpop.f32.mrb[40].mxu1 }
 0x7c8   : > { %v2460_v52 = vadd.f32 %v3976_v47, %v2459_v49  ;;  %v2548_v53 = vadd.f32 %v3977_v48, %v2547_v51  ;;  %v4534_v54 = vpop.f32.mrb[41].mxu1  ;;  %v4514_v55 = vpop.f32.mrb[41].mxu0 }
 0x7c9   : > { %v2550_v56 = vpop.f32.mrb[42].mxu1  ;;  %v2462_v57 = vpop.f32.mrb[42].mxu0 }
 0x7ca   : > { %v5724_v58 = vpack.c.bf16 %v2460_v52, %v2460_v52  ;;  %v5726_v59 = vpack.c.bf16 %v2548_v53, %v2548_v53  ;;  %v4535_v61 = vpop.f32.mrb[43].mxu1  ;;  %v4515_v62 = vpop.f32.mrb[43].mxu0 }
 0x7cc   : > { %v2759_v60 = vsel %vm1146_vm1, %v5724_v58, 0  ;;  %v2805_v3 = vsel %vm1146_vm1, %v5726_v59, 0 }
 0x7cd   : > { %4577 = vmatpush3.bf16.xpose.msra.mxu0 %v2759_v60  ;;  %4583 = vmatpush3.bf16.xpose.msra.mxu1 %v2805_v3 }
 0x7ce   : > { %4588 = vmatprep.subr.bf16.mxu0 %v4957_v1  ;;  %4594 = vmatprep.subr.bf16.mxu1 %v4957_v1 }
 0x7d4   : > { %4579 = vmatmul.mubr.msk.bf16.vlgmr.msra.gmra.mrb[48].mxu0 %vm1146_vm1, %v2747_v50  ;;  %4585 = vmatmul.mubr.msk.bf16.vlgmr.msra.gmra.mrb[48].mxu1 %vm1146_vm1, %v2748_v5 }
 0x7d5   : > { %4590 = vmatprep.mubr.msk.bf16.mxu0 %vm4958_vm0, %v4957_v1  ;;  %4596 = vmatprep.mubr.msk.bf16.mxu1 %vm4958_vm0, %v4957_v1 }
 0x7e7   : > { %v2635_v8 = vpop.f32.mrb[44].mxu0  ;;  %v2723_v9 = vpop.f32.mrb[44].mxu1 }
 0x7e8   : > { %v2636_v10 = vadd.f32 %v3978_v6, %v2635_v8  ;;  %v2724_v11 = vadd.f32 %v3979_v7, %v2723_v9  ;;  %v4574_v12 = vpop.f32.mrb[45].mxu1  ;;  %v4554_v13 = vpop.f32.mrb[45].mxu0 }
 0x7e9   : > { %v2726_v14 = vpop.f32.mrb[46].mxu1  ;;  %v2638_v15 = vpop.f32.mrb[46].mxu0 }
 0x7ea   : > { %v5752_v16 = vpack.c.bf16 %v2636_v10, %v2636_v10  ;;  %v5754_v17 = vpack.c.bf16 %v2724_v11, %v2724_v11  ;;  %v4575_v18 = vpop.f32.mrb[47].mxu1  ;;  %v4555_v19 = vpop.f32.mrb[47].mxu0 }
 0x7ec   : > { %v2851_v22 = vsel %vm1146_vm1, %v5752_v16, 0  ;;  %v2897_v23 = vsel %vm1146_vm1, %v5754_v17, 0 }
 0x7ed   : > { %4589 = vmatpush3.bf16.xpose.msra.mxu0 %v2851_v22  ;;  %4595 = vmatpush3.bf16.xpose.msra.mxu1 %v2897_v23 }
 0x7ee   : > { %4600 = vmatprep.subr.bf16.mxu0 %v4957_v1  ;;  %4606 = vmatprep.subr.bf16.mxu1 %v4957_v1 }
 0x7f4   : > { %4591 = vmatmul.mubr.msk.bf16.vlgmr.msra.gmra.mrb[52].mxu0 %vm1146_vm1, %v2749_v26  ;;  %4597 = vmatmul.mubr.msk.bf16.vlgmr.msra.gmra.mrb[52].mxu1 %vm1146_vm1, %v2750_v27 }
 0x7f5   : > { %4602 = vmatprep.mubr.msk.bf16.mxu0 %vm4958_vm0, %v4957_v1  ;;  %4608 = vmatprep.mubr.msk.bf16.mxu1 %vm4958_vm0, %v4957_v1 }
 0x8a7   : > { %v2795_v33 = vpop.f32.mrb[48].mxu0  ;;  %v2841_v34 = vpop.f32.mrb[48].mxu1 }
 0x8a8   : > { %v2796_v35 = vadd.f32 %v2795_v33, %v2729_v32  ;;  %v4580_v36 = vpop.f32.mrb[49].mxu0  ;;  %v4586_v38 = vpop.f32.mrb[49].mxu1  ;;  %v2842_v41 = vadd.f32 %v2841_v34, %v2729_v32 }
 0x8a9   : > { %v2798_v39 = vpop.f32.mrb[50].mxu0  ;;  %v2844_v40 = vpop.f32.mrb[50].mxu1 }
 0x8aa   : > { %v4581_v42 = vpop.f32.mrb[51].mxu0  ;;  %v4587_v43 = vpop.f32.mrb[51].mxu1  ;;  %v2939_v44 = vsel %vm1340_vm2, %v2796_v35, -inf  ;;  %v2942_v45 = vsel %vm1340_vm2, %v2842_v41, -inf }
 0x8ab   : > { %2940 = vmax.xlane.f32.xlu0 %v2939_v44  ;;  %v4804_v43 = vld [vmem:[%s6028_s13] sm:$0xff]  }
 0x8af   : > { %2943 = vmax.xlane.f32.xlu0 %v2942_v45  ;;  %v4805_v45 = vld [vmem:[%s6028_s13 + $0x8] sm:$0xff]  }
 0x8c7   : > { %v2887_v46 = vpop.f32.mrb[52].mxu0  ;;  %v2933_v47 = vpop.f32.mrb[52].mxu1 }
 0x8c8   : > { %v2888_v48 = vadd.f32 %v2887_v46, %v2729_v32  ;;  %v2934_v49 = vadd.f32 %v2933_v47, %v2729_v32  ;;  %v4592_v51 = vpop.f32.mrb[53].mxu0  ;;  %v4598_v52 = vpop.f32.mrb[53].mxu1  ;;  %v4806_v46 = vld [vmem:[%s6028_s13 + $0x10] sm:$0xff]   ;;  %v4807_v47 = vld [vmem:[%s6028_s13 + $0x18] sm:$0xff]  }
 0x8c9   : > { %v2890_v53 = vpop.f32.mrb[54].mxu0  ;;  %v2936_v54 = vpop.f32.mrb[54].mxu1 }
 0x8ca   : > { %v4593_v55 = vpop.f32.mrb[55].mxu0  ;;  %v4599_v56 = vpop.f32.mrb[55].mxu1  ;;  %v2948_v57 = vsel %vm1340_vm2, %v2934_v49, -inf  ;;  %v2945_v61 = vsel %vm1340_vm2, %v2888_v48, -inf }
 0x8cb   : > { %2949 = vmax.xlane.f32.xlu0 %v2948_v57  ;;  %2946 = vmax.xlane.f32.xlu1 %v2945_v61  ;;  %v4810_v55 = vld [vmem:[%s6028_s13 + $0x28] sm:$0xff]   ;;  %v4809_v57 = vld [vmem:[%s6028_s13 + $0x30] sm:$0xff]  }
 0x8dc   : > { %2988 = vrot.lane.b32.xlu1 %v5724_v58, %s6072_s1 }
 0x938   : > { %v2941_v62 = vpop.xlane.xlu0 %2940 }
 0x939   : > { %v2951_v63 = vsub.f32 %v2796_v35, %v2941_v62 }
 0x93b   : > { %v2955_v2 = vmul.f32 1.442695, %v2951_v63 }
 0x93c   : > { %v2944_v60 = vpop.xlane.xlu0 %2943 }
 0x93d   : > { %4870 = vpow2.f32 %v2955_v2  ;;  %v2952_v3 = vsub.f32 %v2842_v41, %v2944_v60  ;;  %v4811_v60 = vld [vmem:[%s6028_s13 + $0x38] sm:$0xff]  }
 0x93f   : > { %v2957_v0 = vmul.f32 1.442695, %v2952_v3 }
 0x941   : > { %4872 = vpow2.f32 %v2957_v0 }
 0x947   : > { %v4871_v4 = vpop.eup %4870 }
 0x948   : > { %v2963_v50 = vsel %vm1340_vm2, %v4871_v4, 0.0 }
 0x949   : > { %2964 = vadd.xlane.f32.xlu1 %v2963_v50 }
 0x94b   : > { %v4873_v5 = vpop.eup %4872 }
 0x94c   : > { %v2966_v6 = vsel %vm1340_vm2, %v4873_v5, 0.0 }
 0x94d   : > { %2967 = vadd.xlane.f32.xlu0 %v2966_v6 }
 0x958   : > { %v2950_v7 = vpop.xlane.xlu0 %2949  ;;  %v2947_v8 = vpop.xlane.xlu1 %2946 }
 0x959   : > { %v2954_v9 = vsub.f32 %v2934_v49, %v2950_v7  ;;  %v2953_v58 = vsub.f32 %v2888_v48, %v2947_v8  ;;  %v4808_v49 = vld [vmem:[%s6028_s13 + $0x20] sm:$0xff]  }
 0x95b   : > { %v2961_v10 = vmul.f32 1.442695, %v2954_v9  ;;  %v2959_v11 = vmul.f32 1.442695, %v2953_v58 }
 0x95c   : > { %v2989_v12 = vpop.permute.xlu1 %2988 }
 0x95d   : > { %4874 = vpow2.f32 %v2961_v10  ;;  %v2994_v13 = vsel %vm1394_vm3, %v2989_v12, 0 }
 0x95e   : > { %4876 = vpow2.f32 %v2959_v11  ;;  %4601 = vmatpush3.bf16.msra.mxu0 %v2994_v13 }
 0x95f   : > { %4612 = vmatprep.subr.bf16.mxu0 %v4957_v1 }
 0x967   : > { %v4875_v14 = vpop.eup %4874 }
 0x968   : > { %v4877_v15 = vpop.eup %4876  ;;  %v2972_v18 = vsel %vm1340_vm2, %v4875_v14, 0.0 }
 0x969   : > { %2973 = vadd.xlane.f32.xlu0 %v2972_v18  ;;  %v2969_v19 = vsel %vm1340_vm2, %v4877_v15, 0.0 }
 0x96a   : > { %2970 = vadd.xlane.f32.xlu1 %v2969_v19 }
 0x97b   : > { %3086 = vrot.lane.b32.xlu1 %v5752_v16, %s6072_s1 }
 0x97f   : > { %3135 = vrot.lane.b32.xlu1 %v5754_v17, %s6072_s1  ;;  %3037 = vrot.lane.b32.xlu0 %v5726_v59, %s6072_s1 }
 0x9d6   : > { %v2965_v20 = vpop.xlane.xlu1 %2964 }
 0x9d7   : > { %4878 = vrcp.f32 %v2965_v20 }
 0x9da   : > { %v2968_v24 = vpop.xlane.xlu0 %2967 }
 0x9db   : > { %4880 = vrcp.f32 %v2968_v24 }
 0x9e1   : > { %v4879_v21 = vpop.eup %4878 }
 0x9e2   : > { %v2979_v22 = vmul.f32 %v4879_v21, %v4871_v4 }
 0x9e4   : > { %v2983_v23 = vpack.c.bf16 %v2979_v22, %v2979_v22 }
 0x9e5   : > { %v4881_v25 = vpop.eup %4880 }
 0x9e6   : > { %4603 = vmatmul.mubr.msk.bf16.vlgmr.msra.gmra.mrb[56].mxu0 %vm1340_vm2, %v2983_v23  ;;  %v2980_v17 = vmul.f32 %v4881_v25, %v4873_v5  ;;  %v4032_v25 = vld [vmem:[%s6029_s14] ss:$0 sm:$0xff] }
 0x9e7   : > { %4614 = vmatprep.mubr.msk.bf16.mxu0 %vm4958_vm0, %v4957_v1 }
 0x9e8   : > { %v2984_v34 = vpack.c.bf16 %v2980_v17, %v2980_v17 }
 0x9f6   : > { %v2974_v16 = vpop.xlane.xlu0 %2973 }
 0x9f7   : > { %4882 = vrcp.f32 %v2974_v16  ;;  %v2971_v26 = vpop.xlane.xlu1 %2970 }
 0x9f8   : > { %4884 = vrcp.f32 %v2971_v26 }
 0x9fa   : > { %v3038_v27 = vpop.permute.xlu0 %3037 }
 0x9fb   : > { %v3043_v59 = vsel %vm1394_vm3, %v3038_v27, 0  ;;  %v3087_v32 = vpop.permute.xlu1 %3086 }
 0x9fc   : > { %v3092_v33 = vsel %vm1394_vm3, %v3087_v32, 0  ;;  %4607 = vmatpush3.bf16.msra.mxu1 %v3043_v59 }
 0x9fd   : > { %4613 = vmatpush3.bf16.msra.mxu0 %v3092_v33  ;;  %4618 = vmatprep.subr.bf16.mxu1 %v4957_v1 }
 0x9fe   : > { %4624 = vmatprep.subr.bf16.mxu0 %v4957_v1 }
 0x9ff   : > { %v3136_v35 = vpop.permute.xlu1 %3135  ;;  %4609 = vmatmul.mubr.msk.bf16.vlgmr.msra.gmra.mrb[56].mxu1 %vm1340_vm2, %v2984_v34  ;;  %v4812_v34 = vld [vmem:[%s6032_s17] ss:$8 sps:$4 sm:$0xff]  }
 0xa00   : > { %v3141_v36 = vsel %vm1394_vm3, %v3136_v35, 0  ;;  %4620 = vmatprep.mubr.msk.bf16.mxu1 %vm4958_vm0, %v4957_v1  ;;  %v4814_v35 = vld [vmem:[%s6032_s17 + $0x4] ss:$8 sps:$4 sm:$0xff]  }
 0xa01   : > { %v4883_v38 = vpop.eup %4882  ;;  %4619 = vmatpush3.bf16.msra.mxu1 %v3141_v36  ;;  %v4817_v36 = vld [vmem:[%s6032_s17 + $0x14] ss:$8 sps:$4 sm:$0xff]  }
 0xa02   : > { %v4885_v39 = vpop.eup %4884  ;;  %v2982_v40 = vmul.f32 %v4883_v38, %v4875_v14  ;;  %4632 = vmatprep.subr.bf16.mxu1 %v4957_v1  ;;  %v4815_v38 = vld [vmem:[%s6032_s17 + $0x10] ss:$8 sps:$4 sm:$0xff]  }
 0xa03   : > { %v2981_v41 = vmul.f32 %v4885_v39, %v4877_v15  ;;  %v4818_v39 = vld [vmem:[%s6032_s17 + $0x20] ss:$8 sps:$4 sm:$0xff]  }
 0xa04   : > { %v2986_v42 = vpack.c.bf16 %v2982_v40, %v2982_v40 }
 0xa05   : > { %v2985_v44 = vpack.c.bf16 %v2981_v41, %v2981_v41 }
 0xa07   : > { %4615 = vmatmul.mubr.msk.bf16.vlgmr.msra.gmra.mrb[60].mxu0 %vm1340_vm2, %v2985_v44  ;;  %4621 = vmatmul.mubr.msk.bf16.vlgmr.msra.gmra.mrb[60].mxu1 %vm1340_vm2, %v2986_v42  ;;  %v4823_v44 = vld [vmem:[%s6032_s17 + $0x34] ss:$8 sps:$4 sm:$0xff]  }
 0xa08   : > { %4625 = vmatpush3.bf16.msra.mxu0 %v4804_v43  ;;  %4628 = vmatprep.mubr.msk.bf16.mxu0 %vm4958_vm0, %v4957_v1 }
 0xa09   : > { %4626 = vmatprep.subr.bf16.mxu0 %v4957_v1  ;;  %4636 = vmatprep.mubr.msk.bf16.mxu1 %vm4958_vm0, %v4957_v1 }
 0xa0a   : > { %4633 = vmatpush3.bf16.msra.mxu1 %v4806_v46  ;;  %v4826_v46 = vld [vmem:[%s6032_s17 + $0x44] ss:$8 sps:$4 sm:$0xff]  }
 0xa0b   : > { %4634 = vmatprep.subr.bf16.mxu1 %v4957_v1 }
 0xa0c   : > { %4627 = vmatpush3.bf16.msra.mxu0 %v4805_v45  ;;  %v4821_v45 = vld [vmem:[%s6032_s17 + $0x30] ss:$8 sps:$4 sm:$0xff]  }
 0xa0d   : > { %4640 = vmatprep.subr.bf16.mxu0 %v4957_v1 }
 0xa0e   : > { %4635 = vmatpush3.bf16.msra.mxu1 %v4807_v47  ;;  %v4824_v47 = vld [vmem:[%s6032_s17 + $0x40] ss:$8 sps:$4 sm:$0xff]  }
 0xa0f   : > { %4648 = vmatprep.subr.bf16.mxu1 %v4957_v1 }
 0xab9   : > { %v3030_v48 = vpop.f32.mrb[56].mxu0 }
 0xaba   : > { %v3183_v51 = vpack.c.bf16 %v3030_v48, %v3030_v48  ;;  %v4604_v52 = vpop.f32.mrb[57].mxu0  ;;  %v4829_v48 = vld [vmem:[%s6032_s17 + $0x54] ss:$8 sps:$4 sm:$0xff]  }
 0xabb   : > { %v3033_v53 = vpop.f32.mrb[58].mxu0  ;;  %v4830_v52 = vld [vmem:[%s6032_s17 + $0x60] ss:$8 sps:$4 sm:$0xff]  }
 0xabc   : > { %v4605_v54 = vpop.f32.mrb[59].mxu0  ;;  %4629 = vmatmul.mubr.msk.bf16.vlgmr.msra.gmra.mrb[64].mxu0 %vm1146_vm1, %v3183_v51  ;;  %v4832_v51 = vld [vmem:[%s6032_s17 + $0x64] ss:$8 sps:$4 sm:$0xff]   ;;  %v4835_v53 = vld [vmem:[%s6032_s17 + $0x74] ss:$8 sps:$4 sm:$0xff]  }
 0xabd   : > { %4641 = vmatpush3.bf16.msra.mxu0 %v4808_v49  ;;  %4644 = vmatprep.mubr.msk.bf16.mxu0 %vm4958_vm0, %v4957_v1  ;;  %v4827_v49 = vld [vmem:[%s6032_s17 + $0x50] ss:$8 sps:$4 sm:$0xff]  }
 0xabe   : > { %4642 = vmatprep.subr.bf16.mxu0 %v4957_v1  ;;  %v4833_v54 = vld [vmem:[%s6032_s17 + $0x70] ss:$8 sps:$4 sm:$0xff]  }
 0xac1   : > { %4643 = vmatpush3.bf16.msra.mxu0 %v4810_v55  ;;  %v4961_v55 = vmov 0  }
 0xac2   : > { %3548 = vmatprep.subr.bf16.mxu0 %v4814_v35 }
 0xad2   : > { %v3079_v56 = vpop.f32.mrb[56].mxu1 }
 0xad3   : > { %v3184_v61 = vpack.c.bf16 %v3079_v56, %v3079_v56  ;;  %v4610_v62 = vpop.f32.mrb[57].mxu1  ;;  %v4836_v56 = vld [vmem:[%s6034_s19 + $0x40] sm:$0xff]  }
 0xad4   : > { %v3082_v63 = vpop.f32.mrb[58].mxu1  ;;  %v4839_v62 = vld [vmem:[%s6034_s19 + $0x8] sm:$0xff]  }
 0xad5   : > { %v4611_v2 = vpop.f32.mrb[59].mxu1  ;;  %4637 = vmatmul.mubr.msk.bf16.vlgmr.msra.gmra.mrb[64].mxu1 %vm1146_vm1, %v3184_v61  ;;  %v4838_v61 = vld [vmem:[%s6034_s19 + $0x48] sm:$0xff]   ;;  %v4840_v63 = vld [vmem:[%s6034_s19 + $0x50] sm:$0xff]  }
 0xad6   : > { %4649 = vmatpush3.bf16.msra.mxu1 %v4809_v57  ;;  %4652 = vmatprep.mubr.msk.bf16.mxu1 %vm4958_vm0, %v4957_v1  ;;  %v4837_v57 = vld [vmem:[%s6034_s19] sm:$0xff]   ;;  %v4841_v2 = vld [vmem:[%s6034_s19 + $0x10] sm:$0xff]  }
 0xad7   : > { %4650 = vmatprep.subr.bf16.mxu1 %v4957_v1 }
 0xada   : > { %v3128_v3 = vpop.f32.mrb[60].mxu0  ;;  %v3177_v0 = vpop.f32.mrb[60].mxu1  ;;  %4651 = vmatpush3.bf16.msra.mxu1 %v4811_v60  ;;  %v4842_v60 = vld [vmem:[%s6034_s19 + $0x58] sm:$0xff]  }
 0xadb   : > { %v3185_v4 = vpack.c.bf16 %v3128_v3, %v3128_v3  ;;  %v4616_v50 = vpop.f32.mrb[61].mxu0  ;;  %v3186_v5 = vpack.c.bf16 %v3177_v0, %v3177_v0  ;;  %v4622_v6 = vpop.f32.mrb[61].mxu1  ;;  %4234 = vmatprep.subr.bf16.mxu1 %v4836_v56  ;;  %v4843_v3 = vld [vmem:[%s6034_s19 + $0x18] sm:$0xff]   ;;  %v4844_v0 = vld [vmem:[%s6034_s19 + $0x60] sm:$0xff]  }
 0xadc   : > { %v3131_v7 = vpop.f32.mrb[62].mxu0  ;;  %v3180_v8 = vpop.f32.mrb[62].mxu1  ;;  %v4846_v50 = vld [vmem:[%s6034_s19 + $0x68] sm:$0xff]  }
 0xadd   : > { %v4617_v9 = vpop.f32.mrb[63].mxu0  ;;  %4645 = vmatmul.mubr.msk.bf16.vlgmr.msra.gmra.mrb[68].mxu0 %vm1146_vm1, %v3185_v4  ;;  %v4623_v58 = vpop.f32.mrb[63].mxu1  ;;  %4653 = vmatmul.mubr.msk.bf16.vlgmr.msra.gmra.mrb[68].mxu1 %vm1146_vm1, %v3186_v5  ;;  %v4845_v4 = vld [vmem:[%s6034_s19 + $0x20] sm:$0xff]   ;;  %v4847_v5 = vld [vmem:[%s6034_s19 + $0x28] sm:$0xff]  }
 0xade   : > { %3549 = vmatpush1.bf16.msra.mxu0 %v4812_v34  ;;  %3580 = vmatprep.mubr.bf16.mxu0 %v4961_v55  ;;  %v3431_v9 = vsub.s32 1, %v5482_v28  ;;  %v4049_v34 = vld [vmem:[%s6035_s20] ss:$0 sm:$0xff] }
 0xadf   : > { %3550 = vmatprep.subr.bf16.mxu0 %v4817_v36  ;;  %4235 = vmatpush3.bf16.msra.mxu1 %v4837_v57 }
 0xae0   : > { %4236 = vmatprep.subr.bf16.mxu1 %v4838_v61  ;;  %v3432_v58 = vrot.slane %v5490_v30, %v3431_v9  ;;  %v4850_v30 = vld [vmem:[%s6034_s19 + $0x78] sm:$0xff]  }
 0xae2   : > { %3551 = vmatpush1.bf16.msra.mxu0 %v4815_v38 }
 0xae3   : > { %4237 = vmatpush3.bf16.msra.mxu1 %v4839_v62 }
 0xae4   : > { %4238 = vmatprep.subr.bf16.mxu1 %v4840_v63 }
 0xae7   : > { %4239 = vmatpush3.bf16.msra.mxu1 %v4841_v2 }
 0xae8   : > { %4240 = vmatprep.subr.bf16.mxu1 %v4842_v60 }
 0xaeb   : > { %4241 = vmatpush3.bf16.msra.mxu1 %v4843_v3 }
 0xaec   : > { %4242 = vmatprep.subr.bf16.mxu1 %v4844_v0 }
 0xaef   : > { %4243 = vmatpush3.bf16.msra.mxu1 %v4845_v4 }
 0xaf0   : > { %4244 = vmatprep.subr.bf16.mxu1 %v4846_v50 }
 0xaf3   : > { %4245 = vmatpush3.bf16.msra.mxu1 %v4847_v5 }
 0xb8f   : > { %v3236_v10 = vpop.f32.mrb[64].mxu0 }
 0xb90   : > { %v4630_v11 = vpop.f32.mrb[65].mxu0 }
 0xb91   : > { %v3239_v12 = vpop.f32.mrb[66].mxu0 }
 0xb92   : > { %v4631_v13 = vpop.f32.mrb[67].mxu0  ;;  %v3437_v12 = vrot.slane %v5495_v31, %v3431_v9  ;;  %v4851_v31 = vld [vmem:[%s6034_s19 + $0x38] sm:$0xff]  }
 0xba8   : > { %v3291_v1 = vpop.f32.mrb[64].mxu1 }
 0xba9   : > { %v3407_v14 = vadd.f32 %v3291_v1, %v3236_v10  ;;  %v4638_v15 = vpop.f32.mrb[65].mxu1 }
 0xbaa   : > { %v3294_v18 = vpop.f32.mrb[66].mxu1  ;;  %v4848_v15 = vld [vmem:[%s6034_s19 + $0x70] sm:$0xff]  }
 0xbab   : > { %v4639_v19 = vpop.f32.mrb[67].mxu1  ;;  %v4849_v18 = vld [vmem:[%s6034_s19 + $0x30] sm:$0xff]   ;;  %4246 = vmatprep.subr.bf16.mxu1 %v4848_v15 }
 0xbac   : > { %4247 = vmatpush3.bf16.msra.mxu1 %v4849_v18  ;;  %v3456_v19 = vld [vmem:[%s6033_s18] sm:$0x3] }
 0xbad   : > { %4248 = vmatprep.subr.bf16.mxu1 %v4850_v30 }
 0xbb0   : > { %v3346_v20 = vpop.f32.mrb[68].mxu0  ;;  %v3401_v21 = vpop.f32.mrb[68].mxu1  ;;  %4249 = vmatpush3.bf16.msra.mxu1 %v4851_v31 }
 0xbb1   : > { %v3408_v22 = vadd.f32 %v3407_v14, %v3346_v20  ;;  %v4646_v23 = vpop.f32.mrb[69].mxu0  ;;  %v4654_v24 = vpop.f32.mrb[69].mxu1  ;;  %v3461_v20 = vrot.slane %v3456_v19, %v5485_v29 }
 0xbb2   : > { %v3349_v16 = vpop.f32.mrb[70].mxu0  ;;  %v3404_v26 = vpop.f32.mrb[70].mxu1 }
 0xbb3   : > { %v3409_v17 = vadd.f32 %v3408_v22, %v3401_v21  ;;  %v4647_v27 = vpop.f32.mrb[71].mxu0  ;;  %v4655_v59 = vpop.f32.mrb[71].mxu1  ;;  %v3465_v21 = vrot.slane %v3456_v19, %v3431_v9 }
 0xbb5   : > { %v3416_v32 = vadd.f32 %v4032_v25, %v3409_v17 }
 0xbb7   : > { %v3417_v33 = vadd.f32 %v3416_v32, %v5501_v37  ;;  %v4820_v37 = vld [vmem:[%s6032_s17 + $0x24] ss:$8 sps:$4 sm:$0xff]  }
 0xbb8   : > { %3552 = vmatprep.subr.bf16.mxu0 %v4820_v37 }
 0xbb9   : > { %3418 = vadd.xlane.f32.xlu0 %v3417_v33  ;;  %3553 = vmatpush1.bf16.msra.mxu0 %v4818_v39 }
 0xbba   : > { %3554 = vmatprep.subr.bf16.mxu0 %v4823_v44 }
 0xbbd   : > { %3555 = vmatpush1.bf16.msra.mxu0 %v4821_v45 }
 0xbbe   : > { %3556 = vmatprep.subr.bf16.mxu0 %v4826_v46 }
 0xbc1   : > { %3557 = vmatpush1.bf16.msra.mxu0 %v4824_v47  ;;  %v3782_v47 = vsub.s32 2, %v5482_v28 }
 0xbc2   : > { %3558 = vmatprep.subr.bf16.mxu0 %v4829_v48  ;;  %v4891_v48 = vld [vmem:[%s6030_s15] sm:$0x7] }
 0xbc5   : > { %3559 = vmatpush1.bf16.msra.mxu0 %v4827_v49  ;;  %v3783_v49 = vrot.slane %v4891_v48, %v3782_v47 }
 0xbc6   : > { %3560 = vmatprep.subr.bf16.mxu0 %v4832_v51 }
 0xbc9   : > { %3561 = vmatpush1.bf16.msra.mxu0 %v4830_v52 }
 0xbca   : > { %3562 = vmatprep.subr.bf16.mxu0 %v4835_v53  ;;  %v4892_v53 = vld [vmem:[%s6031_s16] sm:$0x7] }
 0xbcd   : > { %3563 = vmatpush1.bf16.msra.mxu0 %v4833_v54  ;;  %v3788_v54 = vrot.slane %v4892_v53, %v3782_v47 }
 0xc46   : > { %v3419_v40 = vpop.xlane.xlu0 %3418 }
 0xc47   : > { %v3420_v41 = vmul.f32 0.0078125, %v3419_v40 }
 0xc49   : > { %v3421_v42 = vsub.f32 %v3417_v33, %v3420_v41 }
 0xc4b   : > { %v3422_v43 = vmul.f32 %v3421_v42, %v3421_v42 }
 0xc4d   : > { %3423 = vadd.xlane.f32.xlu1 %v3422_v43 }
 0xcda   : > { %v3424_v6 = vpop.xlane.xlu1 %3423 }
 0xcdb   : > { %v3425_v7 = vmul.f32 0.0078125, %v3424_v6 }
 0xcdd   : > { %v3426_v8 = vadd.f32 1e-05, %v3425_v7 }
 0xcdf   : > { %4886 = vrsqrt.f32 %v3426_v8 }
 0xce9   : > { %v4887_v10 = vpop.eup %4886 }
 0xcea   : > { %v3428_v11 = vmul.f32 %v4887_v10, %v3421_v42 }
 0xcec   : > { %v3433_v13 = vmul.f32 %v3432_v58, %v3428_v11 }
 0xcee   : > { %v3438_v1 = vadd.f32 %v3437_v12, %v3433_v13 }
 0xcf0   : > { %v3439_v14 = vpack.c.bf16 %v3438_v1, %v3438_v1 }
 0xcf2   : > { %3581 = vmatmul.mubr.bf16.vlgmr.msra.gmra.mrb[72].mxu0 %v3439_v14 }
 0xdc5   : > { %v3582_v22 = vpop.f32.mrb[72].mxu0 }
 0xdc6   : > { %v3583_v23 = vadd.f32 %v3582_v22, %v3461_v20  ;;  %v3584_v24 = vpop.f32.mrb[73].mxu0 }
 0xdc7   : > { %v3585_v25 = vadd.f32 %v3584_v24, %v3465_v21  ;;  %v3586_v16 = vpop.f32.mrb[74].mxu0 }
 0xdc8   : > { %v3589_v26 = vmax.f32 %v3583_v23, 0.0  ;;  %v3587_v17 = vpop.f32.mrb[75].mxu0 }
 0xdc9   : > { %v3590_v27 = vmax.f32 %v3585_v25, 0.0 }
 0xdca   : > { %v3591_v32 = vpack.c.bf16 %v3589_v26, %v3589_v26 }
 0xdcb   : > { %v3592_v59 = vpack.c.bf16 %v3590_v27, %v3590_v27 }
 0xdcd   : > { %3760 = vmatprep.mubr.bf16.mxu1 %v3592_v59 }
 0xdce   : > { %3761 = vmatmul.mubr.bf16.vlgmr.msra.gmra.mrb[72].mxu1 %v3591_v32 }
 0xea1   : > { %v4250_v33 = vpop.f32.mrb[72].mxu1 }
 0xea2   : > { %v4251_v35 = vpop.f32.mrb[73].mxu1 }
 0xea3   : > { %v4252_v29 = vadd.f32 %v4251_v35, %v4250_v33  ;;  %v4253_v36 = vpop.f32.mrb[74].mxu1 }
 0xea4   : > { %v4254_v38 = vpop.f32.mrb[75].mxu1 }
 0xea5   : > { %v3763_v37 = vadd.f32 %v4252_v29, %v4049_v34 }
 0xea7   : > { %v3768_v39 = vadd.f32 %v3763_v37, %v3438_v1 }
 0xea9   : > { %3769 = vadd.xlane.f32.xlu0 %v3768_v39 }
 0xf36   : > { %v3770_v40 = vpop.xlane.xlu0 %3769 }
 0xf37   : > { %v3771_v41 = vmul.f32 0.0078125, %v3770_v40 }
 0xf39   : > { %v3772_v42 = vsub.f32 %v3768_v39, %v3771_v41 }
 0xf3b   : > { %v3773_v43 = vmul.f32 %v3772_v42, %v3772_v42 }
 0xf3d   : > { %3774 = vadd.xlane.f32.xlu0 %v3773_v43 }
 0xfca   : > { %v3775_v44 = vpop.xlane.xlu0 %3774 }
 0xfcb   : > { %v3776_v45 = vmul.f32 0.0078125, %v3775_v44 }
 0xfcd   : > { %v3777_v46 = vadd.f32 1e-05, %v3776_v45 }
 0xfcf   : > { %4888 = vrsqrt.f32 %v3777_v46 }
 0xfd9   : > { %v4889_v51 = vpop.eup %4888 }
 0xfda   : > { %v3779_v52 = vmul.f32 %v4889_v51, %v3772_v42 }
 0xfdc   : > { %v3784_v55 = vmul.f32 %v3783_v49, %v3779_v52 }
 0xfde   : > { %v3789_v56 = vadd.f32 %v3788_v54, %v3784_v55 }
 0xfe0   : > { %3790 = vst [vmem:[%s660_s30] sm:$0xff] %v3789_v56 }
 0xfe1   : > { %4906 = shalt.err (!%p4903_p3)
}
 0xfe2   : > { %s4907_s22 = scalar_lea.hbm %s5973_s7, 128  ;;  %s4911_s30 = scalar_lea.hbm %s6074_s6, 256 }
 0xfe3   : > { %p4908_p4 = scmp.ne.s32.totalorder %s5973_s7, %s4907_s22  ;;  %p4912_p9 = scmp.lt.u32.totalorder %s5973_s7, %s6074_s6 }
 0xfe4   : > { %p4913_p10 = scmp.lt.u32.totalorder %s4911_s30, %s4907_s22  ;;  %p4915_p12 = scmp.lt.u32.totalorder %s4907_s22, %s5973_s7 }
 0xfe5   : > { %p4909_p7 = pnand %p4908_p4, %p5111_p5 }
 0xfe6   : > { %p4914_p11 = por %p4913_p10, %p4912_p9 }
 0xfe7   : > { %p4910_p8 = pneg %p4909_p7 }
 0xfe8   : > { %p4916_p13 = por %p4915_p12, %p4914_p11 }
 0xfea   : > { %p4917_p0 = pnand %p4916_p13, %p4910_p8 }
 0xfec   : > { %4920 = shalt.err (!%p4917_p0)
}
 0xfed   : > { %4656 = dma.vmem_to_hbm [thread:$0]  (%p5111_p5), %s5975_s27, 128, %s5973_s7, %s3792_s28  }
 0xfee PF: > { %s6075_s2 = sld [smem:[#allocation7_spill]]  ;;  %s6076_s0 = sld [smem:[#allocation5_spill]] }
 0xff4   : > { %p4662_p1 = scmp.ge.s32.totalorder %s6075_s2, 2  ;;  %s3817_s4 = sand.u32 1, %s6076_s0  }
 0xff5   : > { %s3818_s23 = scalar_lea.sflag [#allocation3], %s3817_s4 }
 0xff6   : > { %p4659_p2 = pnand %p4662_p1, %p5115_p6 }
 0xff8   : > { %4938 = dma.done.wait (!%p4659_p2), %s3818_s23, 128  }
 0xff9   : > { %4940 = vsyncadd (!%p4659_p2), %s3818_s23, 4294967168  ;;  %s6078_s27 = sld [smem:[#allocation8_spill]]  ;;  %s6079_s22 = sld [smem:[#allocation6_spill]] }
 0xffa   : > { %s6080_s26 = sld [smem:[#allocation9_spill]]  ;;  %s6081_s2 = smov %s4947_s25 }
 0xfff   : > { %p31_p3 = scmp.ge.s32.totalorder %s6078_s27, 4   ;;  %s6082_s25 = smov %s6079_s22 }
0x1001   :  { %33 = sbr.rel (!%p31_p3) target bundleno = 13 (0xd), region = 142 }
0x1008   :  { %3823 = vsyncpa [#allocation3], 1 }
0x1009   :  { %3825 = vsyncpa [#allocation3 + $0x1], 1 }

</bundles_post_ra>
